<compile_context>
chip_gen: v5e
topology: v5e:2x2
jax: 0.10.0
libtpu: 0.0.40
codegen_flags: <defaults>
</compile_context>

<pallas_src>
import functools

import jax
import jax.numpy as jnp
from jax.experimental import pallas as pl
from jax.experimental.pallas import tpu as pltpu

# Layer widths: encoder then decoder (no activations in linear_autoencoder).
DIMS = [28 * 28, 288, 96, 32, 2, 32, 96, 288, 28 * 28]
N_LAYERS = len(DIMS) - 1          # 8 Linear layers
CODE_LAYER = 4                    # output of layer index 3 (0-based) is the code
Y_PAD = 896                       # 7 * 128: lane-dense padded reconstruction width
DEFAULT_TB = 512                  # batch tile (multiple of 8; VMEM-safe everywhere)


def _round_up(n, m):
    return (n + m - 1) // m * m


def _ae_kernel(x_ref, *refs):
    """refs = (w1, b1, ..., w8, b8, y_ref, code_ref); last W/b are lane-padded."""
    param_refs = refs[: 2 * N_LAYERS]
    y_ref = refs[2 * N_LAYERS]
    code_ref = refs[2 * N_LAYERS + 1]

    h = x_ref[...]
    for i in range(N_LAYERS):
        w = param_refs[2 * i][...]
        b = param_refs[2 * i + 1][...]          # shape (1, out_dim), broadcast add
        h = jnp.dot(h, w, preferred_element_type=jnp.float32) + b
        if i == CODE_LAYER - 1:                 # end of encoder
            code_ref[...] = h.astype(code_ref.dtype)
    y_ref[...] = h.astype(y_ref.dtype)


@functools.partial(jax.jit, static_argnames=("tb",))
def linear_autoencoder_forward(x, params, *, tb=DEFAULT_TB):
    """x: (B, 784) float32; params: flat list [w1, b1, ..., w8, b8] (float32)."""
    B = x.shape[0]

    # ---- batch tiling (pad B so every grid step sees a full (tb, ...) tile) ----
    tb = min(tb, _round_up(B, 8))
    b_pad = _round_up(B, tb)
    if b_pad != B:
        x = jnp.pad(x, ((0, b_pad - B), (0, 0)))
    grid = (b_pad // tb,)

    # ---- lane-dense reconstruction output: pad last layer 784 -> 896 ----------
    params = list(params)
    pad_cols = Y_PAD - DIMS[-1]
    params[-2] = jnp.pad(params[-2], ((0, 0), (0, pad_cols)))   # W8: (288, 896)
    params[-1] = jnp.pad(params[-1], ((0, 0), (0, pad_cols)))   # b8: (1, 896)

    def resident_spec(arr):
        # Full-array block, constant index -> DMA'd into VMEM once, stays resident.
        nd = arr.ndim
        return pl.BlockSpec(arr.shape, lambda i, _nd=nd: (0,) * _nd)

    in_specs = [pl.BlockSpec((tb, DIMS[0]), lambda i: (i, 0))]   # x: batch-tiled
    in_specs += [resident_spec(p) for p in params]               # weights/biases

    out_shapes = (
        jax.ShapeDtypeStruct((b_pad, Y_PAD), jnp.float32),           # padded y
        jax.ShapeDtypeStruct((b_pad, DIMS[CODE_LAYER]), jnp.float32),  # code
    )
    out_specs = (
        pl.BlockSpec((tb, Y_PAD), lambda i: (i, 0)),
        pl.BlockSpec((tb, DIMS[CODE_LAYER]), lambda i: (i, 0)),
    )

    y_pad, code = pl.pallas_call(
        _ae_kernel,
        grid=grid,
        in_specs=in_specs,
        out_specs=out_specs,
        out_shape=out_shapes,
        compiler_params=pltpu.CompilerParams(
            # batch tiles are independent -> shard across v7x's 2 TensorCores
            dimension_semantics=("parallel",),
            # working set @ tb=512: ~3.4 MiB x-bufs + ~3.7 MiB y-bufs + ~4.5 MiB
            # weights (double-buffered) + intermediates << 32 MiB on all gens.
            vmem_limit_bytes=32 << 20,
        ),
    )(x, *params)

    # Strip batch padding and the lane padding of the reconstruction.
    return y_pad[:B, : DIMS[-1]], code[:B]


def init_params(key):
    """Deterministic PyTorch-style Linear init: U(-1/sqrt(fan_in), 1/sqrt(fan_in))."""
    params = []
    for i in range(N_LAYERS):
        fan_in, fan_out = DIMS[i], DIMS[i + 1]
        key, kw, kb = jax.random.split(key, 3)
        bound = 1.0 / (fan_in ** 0.5)
        w = jax.random.uniform(kw, (fan_in, fan_out), jnp.float32, -bound, bound)
        b = jax.random.uniform(kb, (1, fan_out), jnp.float32, -bound, bound)
        params += [w, b]
    return params


def reference_forward(x, params):
    h = x
    code = None
    for i in range(N_LAYERS):
        w, b = params[2 * i], params[2 * i + 1]
        h = jnp.dot(h, w, preferred_element_type=jnp.float32) + b
        if i == CODE_LAYER - 1:
            code = h
    return h, code


if __name__ == "__main__":
    key = jax.random.PRNGKey(0)
    key, kx = jax.random.split(key)

    B = 8
    x = jax.random.normal(kx, (B, DIMS[0]), jnp.float32)
    params = init_params(key)

    y, code = linear_autoencoder_forward(x, params)
    jax.block_until_ready((y, code))

    y_ref, code_ref = reference_forward(x, params)
    assert y.shape == (B, DIMS[-1]) and code.shape == (B, DIMS[CODE_LAYER])
    assert jnp.allclose(y, y_ref, rtol=1e-3, atol=1e-3)
    assert jnp.allclose(code, code_ref, rtol=1e-3, atol=1e-3)

    print("KERNEL_OK")
</pallas_src>

<mosaic_0001>
module attributes {stable_mosaic.version = 11 : i64} {
  func.func @_ae_kernel(%arg0: i32, %arg1: memref<8x784xf32, #tpu.memory_space<vmem>>, %arg2: memref<784x288xf32, #tpu.memory_space<vmem>>, %arg3: memref<1x288xf32, #tpu.memory_space<vmem>>, %arg4: memref<288x96xf32, #tpu.memory_space<vmem>>, %arg5: memref<1x96xf32, #tpu.memory_space<vmem>>, %arg6: memref<96x32xf32, #tpu.memory_space<vmem>>, %arg7: memref<1x32xf32, #tpu.memory_space<vmem>>, %arg8: memref<32x2xf32, #tpu.memory_space<vmem>>, %arg9: memref<1x2xf32, #tpu.memory_space<vmem>>, %arg10: memref<2x32xf32, #tpu.memory_space<vmem>>, %arg11: memref<1x32xf32, #tpu.memory_space<vmem>>, %arg12: memref<32x96xf32, #tpu.memory_space<vmem>>, %arg13: memref<1x96xf32, #tpu.memory_space<vmem>>, %arg14: memref<96x288xf32, #tpu.memory_space<vmem>>, %arg15: memref<1x288xf32, #tpu.memory_space<vmem>>, %arg16: memref<288x896xf32, #tpu.memory_space<vmem>>, %arg17: memref<1x896xf32, #tpu.memory_space<vmem>>, %arg18: memref<8x896xf32, #tpu.memory_space<vmem>>, %arg19: memref<8x2xf32, #tpu.memory_space<vmem>>) attributes {dimension_semantics = [#tpu.dimension_semantics<parallel>], iteration_bounds = array<i64: 1>, scalar_prefetch = 0 : i64, scratch_operands = 0 : i64, tpu.core_type = #tpu.core_type<tc>, window_params = [{transform_indices = @transform_0, window_bounds = array<i64: 8, 784>}, {pipeline_mode = #tpu.pipeline_mode<synchronous>, transform_indices = @transform_1, window_bounds = array<i64: 784, 288>}, {pipeline_mode = #tpu.pipeline_mode<synchronous>, transform_indices = @transform_2, window_bounds = array<i64: 1, 288>}, {pipeline_mode = #tpu.pipeline_mode<synchronous>, transform_indices = @transform_3, window_bounds = array<i64: 288, 96>}, {pipeline_mode = #tpu.pipeline_mode<synchronous>, transform_indices = @transform_4, window_bounds = array<i64: 1, 96>}, {pipeline_mode = #tpu.pipeline_mode<synchronous>, transform_indices = @transform_5, window_bounds = array<i64: 96, 32>}, {pipeline_mode = #tpu.pipeline_mode<synchronous>, transform_indices = @transform_6, window_bounds = array<i64: 1, 32>}, {pipeline_mode = #tpu.pipeline_mode<synchronous>, transform_indices = @transform_7, window_bounds = array<i64: 32, 2>}, {pipeline_mode = #tpu.pipeline_mode<synchronous>, transform_indices = @transform_8, window_bounds = array<i64: 1, 2>}, {pipeline_mode = #tpu.pipeline_mode<synchronous>, transform_indices = @transform_9, window_bounds = array<i64: 2, 32>}, {pipeline_mode = #tpu.pipeline_mode<synchronous>, transform_indices = @transform_10, window_bounds = array<i64: 1, 32>}, {pipeline_mode = #tpu.pipeline_mode<synchronous>, transform_indices = @transform_11, window_bounds = array<i64: 32, 96>}, {pipeline_mode = #tpu.pipeline_mode<synchronous>, transform_indices = @transform_12, window_bounds = array<i64: 1, 96>}, {pipeline_mode = #tpu.pipeline_mode<synchronous>, transform_indices = @transform_13, window_bounds = array<i64: 96, 288>}, {pipeline_mode = #tpu.pipeline_mode<synchronous>, transform_indices = @transform_14, window_bounds = array<i64: 1, 288>}, {pipeline_mode = #tpu.pipeline_mode<synchronous>, transform_indices = @transform_15, window_bounds = array<i64: 288, 896>}, {pipeline_mode = #tpu.pipeline_mode<synchronous>, transform_indices = @transform_16, window_bounds = array<i64: 1, 896>}, {transform_indices = @transform_17, window_bounds = array<i64: 8, 896>}, {transform_indices = @transform_18, window_bounds = array<i64: 8, 2>}]} {
    %c0 = arith.constant 0 : index
    %c0_0 = arith.constant 0 : index
    %0 = vector.load %arg1[%c0, %c0_0] : memref<8x784xf32, #tpu.memory_space<vmem>>, vector<8x784xf32>
    %c0_1 = arith.constant 0 : index
    %c0_2 = arith.constant 0 : index
    %1 = vector.load %arg2[%c0_1, %c0_2] : memref<784x288xf32, #tpu.memory_space<vmem>>, vector<784x288xf32>
    %c0_3 = arith.constant 0 : index
    %c0_4 = arith.constant 0 : index
    %2 = vector.load %arg3[%c0_3, %c0_4] : memref<1x288xf32, #tpu.memory_space<vmem>>, vector<1x288xf32>
    %cst = arith.constant dense<0.000000e+00> : vector<8x288xf32>
    %3 = tpu.matmul %0, %1, %cst {dimension_numbers = #tpu.dot_dimension_numbers<[1], [0], [0], [1], [0, 0, 1, 1], [], []>} : vector<8x784xf32>, vector<784x288xf32>, vector<8x288xf32> -> vector<8x288xf32>
    %4 = vector.broadcast %2 : vector<1x288xf32> to vector<8x288xf32>
    %5 = arith.addf %3, %4 : vector<8x288xf32>
    %c0_5 = arith.constant 0 : index
    %c0_6 = arith.constant 0 : index
    %6 = vector.load %arg4[%c0_5, %c0_6] : memref<288x96xf32, #tpu.memory_space<vmem>>, vector<288x96xf32>
    %c0_7 = arith.constant 0 : index
    %c0_8 = arith.constant 0 : index
    %7 = vector.load %arg5[%c0_7, %c0_8] : memref<1x96xf32, #tpu.memory_space<vmem>>, vector<1x96xf32>
    %cst_9 = arith.constant dense<0.000000e+00> : vector<8x96xf32>
    %8 = tpu.matmul %5, %6, %cst_9 {dimension_numbers = #tpu.dot_dimension_numbers<[1], [0], [0], [1], [0, 0, 1, 1], [], []>} : vector<8x288xf32>, vector<288x96xf32>, vector<8x96xf32> -> vector<8x96xf32>
    %9 = vector.broadcast %7 : vector<1x96xf32> to vector<8x96xf32>
    %10 = arith.addf %8, %9 : vector<8x96xf32>
    %c0_10 = arith.constant 0 : index
    %c0_11 = arith.constant 0 : index
    %11 = vector.load %arg6[%c0_10, %c0_11] : memref<96x32xf32, #tpu.memory_space<vmem>>, vector<96x32xf32>
    %c0_12 = arith.constant 0 : index
    %c0_13 = arith.constant 0 : index
    %12 = vector.load %arg7[%c0_12, %c0_13] : memref<1x32xf32, #tpu.memory_space<vmem>>, vector<1x32xf32>
    %cst_14 = arith.constant dense<0.000000e+00> : vector<8x32xf32>
    %13 = tpu.matmul %10, %11, %cst_14 {dimension_numbers = #tpu.dot_dimension_numbers<[1], [0], [0], [1], [0, 0, 1, 1], [], []>} : vector<8x96xf32>, vector<96x32xf32>, vector<8x32xf32> -> vector<8x32xf32>
    %14 = vector.broadcast %12 : vector<1x32xf32> to vector<8x32xf32>
    %15 = arith.addf %13, %14 : vector<8x32xf32>
    %c0_15 = arith.constant 0 : index
    %c0_16 = arith.constant 0 : index
    %16 = vector.load %arg8[%c0_15, %c0_16] : memref<32x2xf32, #tpu.memory_space<vmem>>, vector<32x2xf32>
    %c0_17 = arith.constant 0 : index
    %c0_18 = arith.constant 0 : index
    %17 = vector.load %arg9[%c0_17, %c0_18] : memref<1x2xf32, #tpu.memory_space<vmem>>, vector<1x2xf32>
    %cst_19 = arith.constant dense<0.000000e+00> : vector<8x2xf32>
    %18 = tpu.matmul %15, %16, %cst_19 {dimension_numbers = #tpu.dot_dimension_numbers<[1], [0], [0], [1], [0, 0, 1, 1], [], []>} : vector<8x32xf32>, vector<32x2xf32>, vector<8x2xf32> -> vector<8x2xf32>
    %19 = vector.broadcast %17 : vector<1x2xf32> to vector<8x2xf32>
    %20 = arith.addf %18, %19 : vector<8x2xf32>
    %c0_20 = arith.constant 0 : index
    %c0_21 = arith.constant 0 : index
    %21 = vector.load %arg19[%c0_20, %c0_21] : memref<8x2xf32, #tpu.memory_space<vmem>>, vector<8x2xf32>
    tpu.vector_store %arg19[%c0_20, %c0_21], %20 {strides = array<i32>} : memref<8x2xf32, #tpu.memory_space<vmem>>, vector<8x2xf32>,
    %c0_22 = arith.constant 0 : index
    %c0_23 = arith.constant 0 : index
    %22 = vector.load %arg10[%c0_22, %c0_23] : memref<2x32xf32, #tpu.memory_space<vmem>>, vector<2x32xf32>
    %c0_24 = arith.constant 0 : index
    %c0_25 = arith.constant 0 : index
    %23 = vector.load %arg11[%c0_24, %c0_25] : memref<1x32xf32, #tpu.memory_space<vmem>>, vector<1x32xf32>
    %cst_26 = arith.constant dense<0.000000e+00> : vector<8x32xf32>
    %24 = tpu.matmul %20, %22, %cst_26 {dimension_numbers = #tpu.dot_dimension_numbers<[1], [0], [0], [1], [0, 0, 1, 1], [], []>} : vector<8x2xf32>, vector<2x32xf32>, vector<8x32xf32> -> vector<8x32xf32>
    %25 = vector.broadcast %23 : vector<1x32xf32> to vector<8x32xf32>
    %26 = arith.addf %24, %25 : vector<8x32xf32>
    %c0_27 = arith.constant 0 : index
    %c0_28 = arith.constant 0 : index
    %27 = vector.load %arg12[%c0_27, %c0_28] : memref<32x96xf32, #tpu.memory_space<vmem>>, vector<32x96xf32>
    %c0_29 = arith.constant 0 : index
    %c0_30 = arith.constant 0 : index
    %28 = vector.load %arg13[%c0_29, %c0_30] : memref<1x96xf32, #tpu.memory_space<vmem>>, vector<1x96xf32>
    %cst_31 = arith.constant dense<0.000000e+00> : vector<8x96xf32>
    %29 = tpu.matmul %26, %27, %cst_31 {dimension_numbers = #tpu.dot_dimension_numbers<[1], [0], [0], [1], [0, 0, 1, 1], [], []>} : vector<8x32xf32>, vector<32x96xf32>, vector<8x96xf32> -> vector<8x96xf32>
    %30 = vector.broadcast %28 : vector<1x96xf32> to vector<8x96xf32>
    %31 = arith.addf %29, %30 : vector<8x96xf32>
    %c0_32 = arith.constant 0 : index
    %c0_33 = arith.constant 0 : index
    %32 = vector.load %arg14[%c0_32, %c0_33] : memref<96x288xf32, #tpu.memory_space<vmem>>, vector<96x288xf32>
    %c0_34 = arith.constant 0 : index
    %c0_35 = arith.constant 0 : index
    %33 = vector.load %arg15[%c0_34, %c0_35] : memref<1x288xf32, #tpu.memory_space<vmem>>, vector<1x288xf32>
    %cst_36 = arith.constant dense<0.000000e+00> : vector<8x288xf32>
    %34 = tpu.matmul %31, %32, %cst_36 {dimension_numbers = #tpu.dot_dimension_numbers<[1], [0], [0], [1], [0, 0, 1, 1], [], []>} : vector<8x96xf32>, vector<96x288xf32>, vector<8x288xf32> -> vector<8x288xf32>
    %35 = vector.broadcast %33 : vector<1x288xf32> to vector<8x288xf32>
    %36 = arith.addf %34, %35 : vector<8x288xf32>
    %c0_37 = arith.constant 0 : index
    %c0_38 = arith.constant 0 : index
    %37 = vector.load %arg16[%c0_37, %c0_38] : memref<288x896xf32, #tpu.memory_space<vmem>>, vector<288x896xf32>
    %c0_39 = arith.constant 0 : index
    %c0_40 = arith.constant 0 : index
    %38 = vector.load %arg17[%c0_39, %c0_40] : memref<1x896xf32, #tpu.memory_space<vmem>>, vector<1x896xf32>
    %cst_41 = arith.constant dense<0.000000e+00> : vector<8x896xf32>
    %39 = tpu.matmul %36, %37, %cst_41 {dimension_numbers = #tpu.dot_dimension_numbers<[1], [0], [0], [1], [0, 0, 1, 1], [], []>} : vector<8x288xf32>, vector<288x896xf32>, vector<8x896xf32> -> vector<8x896xf32>
    %40 = vector.broadcast %38 : vector<1x896xf32> to vector<8x896xf32>
    %41 = arith.addf %39, %40 : vector<8x896xf32>
    %c0_42 = arith.constant 0 : index
    %c0_43 = arith.constant 0 : index
    %42 = vector.load %arg18[%c0_42, %c0_43] : memref<8x896xf32, #tpu.memory_space<vmem>>, vector<8x896xf32>
    tpu.vector_store %arg18[%c0_42, %c0_43], %41 {strides = array<i32>} : memref<8x896xf32, #tpu.memory_space<vmem>>, vector<8x896xf32>,
    return
  }
  func.func @transform_0(%arg0: i32) -> (i32, i32) {
    %c0_i32 = arith.constant 0 : i32
    %c0_i32_0 = arith.constant 0 : i32
    return %arg0, %c0_i32 : i32, i32
  }
  func.func @transform_1(%arg0: i32) -> (i32, i32) {
    %c0_i32 = arith.constant 0 : i32
    %c0_i32_0 = arith.constant 0 : i32
    %c0_i32_1 = arith.constant 0 : i32
    return %c0_i32, %c0_i32_0 : i32, i32
  }
  func.func @transform_2(%arg0: i32) -> (i32, i32) {
    %c0_i32 = arith.constant 0 : i32
    %c0_i32_0 = arith.constant 0 : i32
    %c0_i32_1 = arith.constant 0 : i32
    return %c0_i32, %c0_i32_0 : i32, i32
  }
  func.func @transform_3(%arg0: i32) -> (i32, i32) {
    %c0_i32 = arith.constant 0 : i32
    %c0_i32_0 = arith.constant 0 : i32
    %c0_i32_1 = arith.constant 0 : i32
    return %c0_i32, %c0_i32_0 : i32, i32
  }
  func.func @transform_4(%arg0: i32) -> (i32, i32) {
    %c0_i32 = arith.constant 0 : i32
    %c0_i32_0 = arith.constant 0 : i32
    %c0_i32_1 = arith.constant 0 : i32
    return %c0_i32, %c0_i32_0 : i32, i32
  }
  func.func @transform_5(%arg0: i32) -> (i32, i32) {
    %c0_i32 = arith.constant 0 : i32
    %c0_i32_0 = arith.constant 0 : i32
    %c0_i32_1 = arith.constant 0 : i32
    return %c0_i32, %c0_i32_0 : i32, i32
  }
  func.func @transform_6(%arg0: i32) -> (i32, i32) {
    %c0_i32 = arith.constant 0 : i32
    %c0_i32_0 = arith.constant 0 : i32
    %c0_i32_1 = arith.constant 0 : i32
    return %c0_i32, %c0_i32_0 : i32, i32
  }
  func.func @transform_7(%arg0: i32) -> (i32, i32) {
    %c0_i32 = arith.constant 0 : i32
    %c0_i32_0 = arith.constant 0 : i32
    %c0_i32_1 = arith.constant 0 : i32
    return %c0_i32, %c0_i32_0 : i32, i32
  }
  func.func @transform_8(%arg0: i32) -> (i32, i32) {
    %c0_i32 = arith.constant 0 : i32
    %c0_i32_0 = arith.constant 0 : i32
    %c0_i32_1 = arith.constant 0 : i32
    return %c0_i32, %c0_i32_0 : i32, i32
  }
  func.func @transform_9(%arg0: i32) -> (i32, i32) {
    %c0_i32 = arith.constant 0 : i32
    %c0_i32_0 = arith.constant 0 : i32
    %c0_i32_1 = arith.constant 0 : i32
    return %c0_i32, %c0_i32_0 : i32, i32
  }
  func.func @transform_10(%arg0: i32) -> (i32, i32) {
    %c0_i32 = arith.constant 0 : i32
    %c0_i32_0 = arith.constant 0 : i32
    %c0_i32_1 = arith.constant 0 : i32
    return %c0_i32, %c0_i32_0 : i32, i32
  }
  func.func @transform_11(%arg0: i32) -> (i32, i32) {
    %c0_i32 = arith.constant 0 : i32
    %c0_i32_0 = arith.constant 0 : i32
    %c0_i32_1 = arith.constant 0 : i32
    return %c0_i32, %c0_i32_0 : i32, i32
  }
  func.func @transform_12(%arg0: i32) -> (i32, i32) {
    %c0_i32 = arith.constant 0 : i32
    %c0_i32_0 = arith.constant 0 : i32
    %c0_i32_1 = arith.constant 0 : i32
    return %c0_i32, %c0_i32_0 : i32, i32
  }
  func.func @transform_13(%arg0: i32) -> (i32, i32) {
    %c0_i32 = arith.constant 0 : i32
    %c0_i32_0 = arith.constant 0 : i32
    %c0_i32_1 = arith.constant 0 : i32
    return %c0_i32, %c0_i32_0 : i32, i32
  }
  func.func @transform_14(%arg0: i32) -> (i32, i32) {
    %c0_i32 = arith.constant 0 : i32
    %c0_i32_0 = arith.constant 0 : i32
    %c0_i32_1 = arith.constant 0 : i32
    return %c0_i32, %c0_i32_0 : i32, i32
  }
  func.func @transform_15(%arg0: i32) -> (i32, i32) {
    %c0_i32 = arith.constant 0 : i32
    %c0_i32_0 = arith.constant 0 : i32
    %c0_i32_1 = arith.constant 0 : i32
    return %c0_i32, %c0_i32_0 : i32, i32
  }
  func.func @transform_16(%arg0: i32) -> (i32, i32) {
    %c0_i32 = arith.constant 0 : i32
    %c0_i32_0 = arith.constant 0 : i32
    %c0_i32_1 = arith.constant 0 : i32
    return %c0_i32, %c0_i32_0 : i32, i32
  }
  func.func @transform_17(%arg0: i32) -> (i32, i32) {
    %c0_i32 = arith.constant 0 : i32
    %c0_i32_0 = arith.constant 0 : i32
    return %arg0, %c0_i32 : i32, i32
  }
  func.func @transform_18(%arg0: i32) -> (i32, i32) {
    %c0_i32 = arith.constant 0 : i32
    %c0_i32_0 = arith.constant 0 : i32
    return %arg0, %c0_i32 : i32, i32
  }
}

</mosaic_0001>

<bundles_post_ra>
// kernel: linear_autoencoder_forward.1
= control target key start
LH: loop header
LB: loop body
LE: loop exit
PB: predicated region body
PF: predicated region fallthrough
CT: control target
= control target key end

     0   :  { %s4056_s0 = inlined_call_operand.vmem [shape: f32[8,784], index: 0, kind: input, shape index: {}]   ;;  %s4057_s1 = inlined_call_operand.vmem [shape: f32[784,288], index: 1, kind: input, shape index: {}]   ;;  %s4058_s2 = inlined_call_operand.vmem [shape: f32[1,288], index: 2, kind: input, shape index: {}]   ;;  %s4059_s3 = inlined_call_operand.vmem [shape: f32[288,96], index: 3, kind: input, shape index: {}]   ;;  %s4060_s4 = inlined_call_operand.vmem [shape: f32[1,96], index: 4, kind: input, shape index: {}]   ;;  %s4061_s5 = inlined_call_operand.vmem [shape: f32[96,32], index: 5, kind: input, shape index: {}]   ;;  %s4062_s6 = inlined_call_operand.vmem [shape: f32[1,32], index: 6, kind: input, shape index: {}]   ;;  %s4063_s7 = inlined_call_operand.vmem [shape: f32[32,2], index: 7, kind: input, shape index: {}]   ;;  %s4064_s8 = inlined_call_operand.vmem [shape: f32[1,2], index: 8, kind: input, shape index: {}]   ;;  %s4065_s9 = inlined_call_operand.vmem [shape: f32[2,32], index: 9, kind: input, shape index: {}]   ;;  %s4066_s10 = inlined_call_operand.vmem [shape: f32[1,32], index: 10, kind: input, shape index: {}]   ;;  %s4067_s11 = inlined_call_operand.vmem [shape: f32[32,96], index: 11, kind: input, shape index: {}]   ;;  %s4068_s12 = inlined_call_operand.vmem [shape: f32[1,96], index: 12, kind: input, shape index: {}]   ;;  %s4069_s13 = inlined_call_operand.vmem [shape: f32[96,288], index: 13, kind: input, shape index: {}]   ;;  %s4070_s14 = inlined_call_operand.vmem [shape: f32[1,288], index: 14, kind: input, shape index: {}]   ;;  %s4071_s15 = inlined_call_operand.vmem [shape: f32[288,896], index: 15, kind: input, shape index: {}]   ;;  %s4072_s16 = inlined_call_operand.vmem [shape: f32[1,896], index: 16, kind: input, shape index: {}]   ;;  %s4073_s17 = inlined_call_operand.hbm [shape: f32[8,896], index: 17, kind: output, shape index: {0}]   ;;  %s4074_s18 = inlined_call_operand.vmem [shape: f32[8,2], index: 18, kind: output, shape index: {1}]  }
   0x1   :  { %4077 = sst [smem:[#allocation5_spill]] %s4056_s0 }
   0x2   :  { %4078 = sst [smem:[#allocation6_spill]] %s4057_s1 }
   0x3   :  { %4079 = sst [smem:[#allocation7_spill]] %s4058_s2 }
   0x4   :  { %s4080_s29 = sld [smem:[#allocation6_spill]]  ;;  %vm368_vm0 = vcmask 130048  }
   0x5   :  { %s4081_s25 = sld [smem:[#allocation5_spill]] }
   0xa   :  { %v207_v0 = vld [vmem:[%s4080_s29 + $0x468] sm:$0xff]  ;;  %v204_v2 = vld [vmem:[%s4080_s29 + $0x450] sm:$0xff]  ;;  %v201_v6 = vld [vmem:[%s4080_s29 + $0x438] sm:$0xff] }
   0xb   :  { %v255_v1 = vld [vmem:[%s4080_s29 + $0x5e8] sm:$0xff]  ;;  %412 = vmatpush.msra.mxu2 %v207_v0  ;;  %v252_v3 = vld [vmem:[%s4080_s29 + $0x5d0] sm:$0xff]  ;;  %v249_v7 = vld [vmem:[%s4080_s29 + $0x5b8] sm:$0xff] }
   0xc   :  { %432 = vmatpush.msra.mxu3 %v255_v1  ;;  %v111_v4 = vld [vmem:[%s4080_s29 + $0x168] sm:$0xff]  ;;  %v108_v8 = vld [vmem:[%s4080_s29 + $0x150] sm:$0xff]  ;;  %v198_v10 = vld [vmem:[%s4080_s29 + $0x420] sm:$0xff] }
   0xd   :  { %v159_v5 = vld [vmem:[%s4080_s29 + $0x2e8] sm:$0xff]  ;;  %372 = vmatpush.msra.mxu0 %v111_v4  ;;  %413 = vmatpush.msra.mxu2 %v204_v2  ;;  %v156_v9 = vld [vmem:[%s4080_s29 + $0x2d0] sm:$0xff]  ;;  %v246_v11 = vld [vmem:[%s4080_s29 + $0x5a0] sm:$0xff] }
   0xe   :  { %392 = vmatpush.msra.mxu1 %v159_v5  ;;  %433 = vmatpush.msra.mxu3 %v252_v3  ;;  %v105_v12 = vld [vmem:[%s4080_s29 + $0x138] sm:$0xff]  ;;  %v102_v14 = vld [vmem:[%s4080_s29 + $0x120] sm:$0xff]  ;;  %v195_v16 = vld [vmem:[%s4080_s29 + $0x408] sm:$0xff] }
   0xf   :  { %373 = vmatpush.msra.mxu0 %v108_v8  ;;  %v153_v13 = vld [vmem:[%s4080_s29 + $0x2b8] sm:$0xff]  ;;  %414 = vmatpush.msra.mxu2 %v201_v6  ;;  %v150_v15 = vld [vmem:[%s4080_s29 + $0x2a0] sm:$0xff]  ;;  %v243_v17 = vld [vmem:[%s4080_s29 + $0x588] sm:$0xff] }
  0x10   :  { %393 = vmatpush.msra.mxu1 %v156_v9  ;;  %434 = vmatpush.msra.mxu3 %v249_v7  ;;  %v99_v18 = vld [vmem:[%s4080_s29 + $0x108] sm:$0xff]  ;;  %v192_v20 = vld [vmem:[%s4080_s29 + $0x3f0] sm:$0xff]  ;;  %v189_v24 = vld [vmem:[%s4080_s29 + $0x3d8] sm:$0xff] }
  0x11   :  { %374 = vmatpush.msra.mxu0 %v105_v12  ;;  %415 = vmatpush.msra.mxu2 %v198_v10  ;;  %v147_v19 = vld [vmem:[%s4080_s29 + $0x288] sm:$0xff]  ;;  %v240_v21 = vld [vmem:[%s4080_s29 + $0x570] sm:$0xff]  ;;  %v237_v25 = vld [vmem:[%s4080_s29 + $0x558] sm:$0xff] }
  0x12   :  { %394 = vmatpush.msra.mxu1 %v153_v13  ;;  %435 = vmatpush.msra.mxu3 %v246_v11  ;;  %v96_v22 = vld [vmem:[%s4080_s29 + $0xf0] sm:$0xff]  ;;  %v93_v26 = vld [vmem:[%s4080_s29 + $0xd8] sm:$0xff]  ;;  %v186_v28 = vld [vmem:[%s4080_s29 + $0x3c0] sm:$0xff] }
  0x13   :  { %375 = vmatpush.msra.mxu0 %v102_v14  ;;  %416 = vmatpush.msra.mxu2 %v195_v16  ;;  %v144_v23 = vld [vmem:[%s4080_s29 + $0x270] sm:$0xff]  ;;  %v141_v27 = vld [vmem:[%s4080_s29 + $0x258] sm:$0xff]  ;;  %v234_v29 = vld [vmem:[%s4080_s29 + $0x540] sm:$0xff] }
  0x14   :  { %395 = vmatpush.msra.mxu1 %v150_v15  ;;  %436 = vmatpush.msra.mxu3 %v243_v17  ;;  %v90_v30 = vld [vmem:[%s4080_s29 + $0xc0] sm:$0xff]  ;;  %v183_v32 = vld [vmem:[%s4080_s29 + $0x3a8] sm:$0xff]  ;;  %v180_v36 = vld [vmem:[%s4080_s29 + $0x390] sm:$0xff] }
  0x15   :  { %376 = vmatpush.msra.mxu0 %v99_v18  ;;  %417 = vmatpush.msra.mxu2 %v192_v20  ;;  %v138_v31 = vld [vmem:[%s4080_s29 + $0x240] sm:$0xff]  ;;  %v231_v33 = vld [vmem:[%s4080_s29 + $0x528] sm:$0xff]  ;;  %v228_v37 = vld [vmem:[%s4080_s29 + $0x510] sm:$0xff] }
  0x16   :  { %396 = vmatpush.msra.mxu1 %v147_v19  ;;  %437 = vmatpush.msra.mxu3 %v240_v21  ;;  %v87_v34 = vld [vmem:[%s4080_s29 + $0xa8] sm:$0xff]  ;;  %v84_v38 = vld [vmem:[%s4080_s29 + $0x90] sm:$0xff]  ;;  %v177_v40 = vld [vmem:[%s4080_s29 + $0x378] sm:$0xff] }
  0x17   :  { %377 = vmatpush.msra.mxu0 %v96_v22  ;;  %418 = vmatpush.msra.mxu2 %v189_v24  ;;  %v135_v35 = vld [vmem:[%s4080_s29 + $0x228] sm:$0xff]  ;;  %v132_v39 = vld [vmem:[%s4080_s29 + $0x210] sm:$0xff]  ;;  %v225_v41 = vld [vmem:[%s4080_s29 + $0x4f8] sm:$0xff] }
  0x18   :  { %397 = vmatpush.msra.mxu1 %v144_v23  ;;  %438 = vmatpush.msra.mxu3 %v237_v25  ;;  %v81_v42 = vld [vmem:[%s4080_s29 + $0x78] sm:$0xff]  ;;  %v174_v44 = vld [vmem:[%s4080_s29 + $0x360] sm:$0xff]  ;;  %v171_v48 = vld [vmem:[%s4080_s29 + $0x348] sm:$0xff] }
  0x19   :  { %378 = vmatpush.msra.mxu0 %v93_v26  ;;  %419 = vmatpush.msra.mxu2 %v186_v28  ;;  %v129_v43 = vld [vmem:[%s4080_s29 + $0x1f8] sm:$0xff]  ;;  %v222_v45 = vld [vmem:[%s4080_s29 + $0x4e0] sm:$0xff]  ;;  %v219_v49 = vld [vmem:[%s4080_s29 + $0x4c8] sm:$0xff] }
  0x1a   :  { %398 = vmatpush.msra.mxu1 %v141_v27  ;;  %439 = vmatpush.msra.mxu3 %v234_v29  ;;  %v78_v46 = vld [vmem:[%s4080_s29 + $0x60] sm:$0xff]  ;;  %v75_v50 = vld [vmem:[%s4080_s29 + $0x48] sm:$0xff]  ;;  %v168_v52 = vld [vmem:[%s4080_s29 + $0x330] sm:$0xff] }
  0x1b   :  { %379 = vmatpush.msra.mxu0 %v90_v30  ;;  %420 = vmatpush.msra.mxu2 %v183_v32  ;;  %v126_v47 = vld [vmem:[%s4080_s29 + $0x1e0] sm:$0xff]  ;;  %v123_v51 = vld [vmem:[%s4080_s29 + $0x1c8] sm:$0xff]  ;;  %v216_v53 = vld [vmem:[%s4080_s29 + $0x4b0] sm:$0xff] }
  0x1c   :  { %399 = vmatpush.msra.mxu1 %v138_v31  ;;  %440 = vmatpush.msra.mxu3 %v231_v33  ;;  %v72_v54 = vld [vmem:[%s4080_s29 + $0x30] sm:$0xff]  ;;  %v165_v56 = vld [vmem:[%s4080_s29 + $0x318] sm:$0xff]  ;;  %v162_v60 = vld [vmem:[%s4080_s29 + $0x300] sm:$0xff] }
  0x1d   :  { %380 = vmatpush.msra.mxu0 %v87_v34  ;;  %421 = vmatpush.msra.mxu2 %v180_v36  ;;  %v120_v55 = vld [vmem:[%s4080_s29 + $0x1b0] sm:$0xff]  ;;  %v213_v57 = vld [vmem:[%s4080_s29 + $0x498] sm:$0xff]  ;;  %v210_v61 = vld [vmem:[%s4080_s29 + $0x480] sm:$0xff] }
  0x1e   :  { %400 = vmatpush.msra.mxu1 %v135_v35  ;;  %441 = vmatpush.msra.mxu3 %v228_v37  ;;  %v69_v58 = vld [vmem:[%s4080_s29 + $0x18] sm:$0xff]  ;;  %v112_v63 = vld [vmem:[%s4080_s29 + $0x170] sm:$0xff]  ;;  %v66_v0 = vld [vmem:[%s4080_s29] sm:$0xff] }
  0x1f   :  { %381 = vmatpush.msra.mxu0 %v84_v38  ;;  %422 = vmatpush.msra.mxu2 %v177_v40  ;;  %v117_v59 = vld [vmem:[%s4080_s29 + $0x198] sm:$0xff]  ;;  %v114_v1 = vld [vmem:[%s4080_s29 + $0x180] sm:$0xff]  ;;  %v2211_v4 = vld [vmem:[%s4081_s25 + $0x10] sm:$0xff] }
  0x20   :  { %401 = vmatpush.msra.mxu1 %v132_v39  ;;  %442 = vmatpush.msra.mxu3 %v225_v41  ;;  %v357_v62 = vld [vmem:[%s4080_s29 + $0x918] sm:$0xff]  ;;  %v354_v2 = vld [vmem:[%s4080_s29 + $0x900] sm:$0xff]  ;;  %v303_v5 = vld [vmem:[%s4080_s29 + $0x768] sm:$0xff] }
  0x21   :  { %382 = vmatpush.msra.mxu0 %v81_v42  ;;  %423 = vmatpush.msra.mxu2 %v174_v44  ;;  %v109_v3 = vld [vmem:[%s4080_s29 + $0x158] sm:$0xff]  ;;  %v160_v6 = vld [vmem:[%s4080_s29 + $0x2f0] sm:$0xff]  ;;  %v351_v7 = vld [vmem:[%s4080_s29 + $0x8e8] sm:$0xff] }
  0x22   :  { %402 = vmatpush.msra.mxu1 %v129_v43  ;;  %443 = vmatpush.msra.mxu3 %v222_v45  ;;  %v106_v8 = vld [vmem:[%s4080_s29 + $0x140] sm:$0xff]  ;;  %v300_v9 = vld [vmem:[%s4080_s29 + $0x750] sm:$0xff]  ;;  %v157_v10 = vld [vmem:[%s4080_s29 + $0x2d8] sm:$0xff] }
  0x23   :  { %383 = vmatpush.msra.mxu0 %v78_v46  ;;  %424 = vmatpush.msra.mxu2 %v171_v48  ;;  %v348_v11 = vld [vmem:[%s4080_s29 + $0x8d0] sm:$0xff]  ;;  %v103_v12 = vld [vmem:[%s4080_s29 + $0x128] sm:$0xff]  ;;  %v297_v13 = vld [vmem:[%s4080_s29 + $0x738] sm:$0xff] }
  0x24   :  { %403 = vmatpush.msra.mxu1 %v126_v47  ;;  %444 = vmatpush.msra.mxu3 %v219_v49  ;;  %v154_v14 = vld [vmem:[%s4080_s29 + $0x2c0] sm:$0xff]  ;;  %v345_v15 = vld [vmem:[%s4080_s29 + $0x8b8] sm:$0xff]  ;;  %v100_v16 = vld [vmem:[%s4080_s29 + $0x110] sm:$0xff] }
  0x25   :  { %384 = vmatpush.msra.mxu0 %v75_v50  ;;  %425 = vmatpush.msra.mxu2 %v168_v52  ;;  %v294_v17 = vld [vmem:[%s4080_s29 + $0x720] sm:$0xff]  ;;  %v151_v18 = vld [vmem:[%s4080_s29 + $0x2a8] sm:$0xff]  ;;  %v97_v20 = vld [vmem:[%s4080_s29 + $0xf8] sm:$0xff] }
  0x26   :  { %404 = vmatpush.msra.mxu1 %v123_v51  ;;  %445 = vmatpush.msra.mxu3 %v216_v53  ;;  %v342_v19 = vld [vmem:[%s4080_s29 + $0x8a0] sm:$0xff]  ;;  %v291_v21 = vld [vmem:[%s4080_s29 + $0x708] sm:$0xff]  ;;  %v148_v22 = vld [vmem:[%s4080_s29 + $0x290] sm:$0xff] }
  0x27   :  { %385 = vmatpush.msra.mxu0 %v72_v54  ;;  %426 = vmatpush.msra.mxu2 %v165_v56  ;;  %v339_v23 = vld [vmem:[%s4080_s29 + $0x888] sm:$0xff]  ;;  %v94_v24 = vld [vmem:[%s4080_s29 + $0xe0] sm:$0xff]  ;;  %v288_v25 = vld [vmem:[%s4080_s29 + $0x6f0] sm:$0xff] }
  0x28   :  { %405 = vmatpush.msra.mxu1 %v120_v55  ;;  %446 = vmatpush.msra.mxu3 %v213_v57  ;;  %v145_v26 = vld [vmem:[%s4080_s29 + $0x278] sm:$0xff]  ;;  %v336_v27 = vld [vmem:[%s4080_s29 + $0x870] sm:$0xff]  ;;  %v91_v28 = vld [vmem:[%s4080_s29 + $0xc8] sm:$0xff] }
  0x29   :  { %386 = vmatpush.msra.mxu0 %v69_v58  ;;  %427 = vmatpush.msra.mxu2 %v162_v60  ;;  %v285_v29 = vld [vmem:[%s4080_s29 + $0x6d8] sm:$0xff]  ;;  %v142_v30 = vld [vmem:[%s4080_s29 + $0x260] sm:$0xff]  ;;  %v88_v32 = vld [vmem:[%s4080_s29 + $0xb0] sm:$0xff] }
  0x2a   :  { %406 = vmatpush.msra.mxu1 %v117_v59  ;;  %447 = vmatpush.msra.mxu3 %v210_v61  ;;  %v333_v31 = vld [vmem:[%s4080_s29 + $0x858] sm:$0xff]  ;;  %v282_v33 = vld [vmem:[%s4080_s29 + $0x6c0] sm:$0xff]  ;;  %v139_v34 = vld [vmem:[%s4080_s29 + $0x248] sm:$0xff] }
  0x2b   :  { %506 = vmatpush.msrb.mxu2 %v357_v62  ;;  %387 = vmatpush.msra.mxu0 %v66_v0  ;;  %v330_v35 = vld [vmem:[%s4080_s29 + $0x840] sm:$0xff]  ;;  %v85_v36 = vld [vmem:[%s4080_s29 + $0x98] sm:$0xff]  ;;  %v279_v37 = vld [vmem:[%s4080_s29 + $0x6a8] sm:$0xff] }
  0x2c   :  { %512 = vmatpush.msrb.mxu3 %v112_v63  ;;  %407 = vmatpush.msra.mxu1 %v114_v1  ;;  %v136_v38 = vld [vmem:[%s4080_s29 + $0x230] sm:$0xff]  ;;  %v327_v39 = vld [vmem:[%s4080_s29 + $0x828] sm:$0xff]  ;;  %v82_v40 = vld [vmem:[%s4080_s29 + $0x80] sm:$0xff] }
  0x2d   :  { %507 = vmatpush.msrb.mxu2 %v354_v2  ;;  %452 = vmatpush.msrb.mxu0 %v303_v5  ;;  %v276_v41 = vld [vmem:[%s4080_s29 + $0x690] sm:$0xff]  ;;  %v133_v42 = vld [vmem:[%s4080_s29 + $0x218] sm:$0xff]  ;;  %v79_v44 = vld [vmem:[%s4080_s29 + $0x68] sm:$0xff] }
  0x2e   :  { %513 = vmatpush.msrb.mxu3 %v109_v3  ;;  %428 = vmatmul.f32.vlgmr.msra.gmra.mxu2 %v2211_v4  ;;  %v324_v43 = vld [vmem:[%s4080_s29 + $0x810] sm:$0xff]  ;;  %v273_v45 = vld [vmem:[%s4080_s29 + $0x678] sm:$0xff]  ;;  %v130_v46 = vld [vmem:[%s4080_s29 + $0x200] sm:$0xff] }
  0x2f   :  { %532 = vmatpush.msra.mxu2 %v160_v6  ;;  %472 = vmatpush.msrb.mxu1 %v351_v7  ;;  %v321_v47 = vld [vmem:[%s4080_s29 + $0x7f8] sm:$0xff]  ;;  %v76_v48 = vld [vmem:[%s4080_s29 + $0x50] sm:$0xff]  ;;  %v270_v49 = vld [vmem:[%s4080_s29 + $0x660] sm:$0xff] }
  0x30   :  { %514 = vmatpush.msrb.mxu3 %v106_v8  ;;  %453 = vmatpush.msrb.mxu0 %v300_v9  ;;  %v127_v50 = vld [vmem:[%s4080_s29 + $0x1e8] sm:$0xff]  ;;  %v318_v51 = vld [vmem:[%s4080_s29 + $0x7e0] sm:$0xff]  ;;  %v73_v52 = vld [vmem:[%s4080_s29 + $0x38] sm:$0xff] }
  0x31   :  { %533 = vmatpush.msra.mxu2 %v157_v10  ;;  %473 = vmatpush.msrb.mxu1 %v348_v11  ;;  %v267_v53 = vld [vmem:[%s4080_s29 + $0x648] sm:$0xff]  ;;  %v124_v54 = vld [vmem:[%s4080_s29 + $0x1d0] sm:$0xff]  ;;  %v70_v56 = vld [vmem:[%s4080_s29 + $0x20] sm:$0xff] }
  0x32   :  { %515 = vmatpush.msrb.mxu3 %v103_v12  ;;  %454 = vmatpush.msrb.mxu0 %v297_v13  ;;  %v315_v55 = vld [vmem:[%s4080_s29 + $0x7c8] sm:$0xff]  ;;  %v2373_v57 = vld [vmem:[%s4081_s25] sm:$0xff]  ;;  %v2378_v58 = vld [vmem:[%s4081_s25 + $0x18] sm:$0xff] }
  0x33   :  { %534 = vmatpush.msra.mxu2 %v154_v14  ;;  %474 = vmatpush.msrb.mxu1 %v345_v15  ;;  %v264_v59 = vld [vmem:[%s4080_s29 + $0x630] sm:$0xff]  ;;  %v121_v60 = vld [vmem:[%s4080_s29 + $0x1b8] sm:$0xff]  ;;  %v67_v62 = vld [vmem:[%s4080_s29 + $0x8] sm:$0xff] }
  0x34   :  { %516 = vmatpush.msrb.mxu3 %v100_v16  ;;  %455 = vmatpush.msrb.mxu0 %v294_v17  ;;  %v312_v61 = vld [vmem:[%s4080_s29 + $0x7b0] sm:$0xff]  ;;  %v2396_v63 = vld [vmem:[%s4081_s25 + $0x8] sm:$0xff]  ;;  %v261_v0 = vld [vmem:[%s4080_s29 + $0x618] sm:$0xff] }
  0x35   :  { %535 = vmatpush.msra.mxu2 %v151_v18  ;;  %475 = vmatpush.msrb.mxu1 %v342_v19  ;;  %v118_v1 = vld [vmem:[%s4080_s29 + $0x1a0] sm:$0xff]  ;;  %v304_v2 = vld [vmem:[%s4080_s29 + $0x770] sm:$0xff]  ;;  %v309_v3 = vld [vmem:[%s4080_s29 + $0x798] sm:$0xff] }
  0x36   :  { %517 = vmatpush.msrb.mxu3 %v97_v20  ;;  %456 = vmatpush.msrb.mxu0 %v291_v21  ;;  %v258_v5 = vld [vmem:[%s4080_s29 + $0x600] sm:$0xff]  ;;  %v115_v6 = vld [vmem:[%s4080_s29 + $0x188] sm:$0xff]  ;;  %v301_v7 = vld [vmem:[%s4080_s29 + $0x758] sm:$0xff] }
  0x37   :  { %536 = vmatpush.msra.mxu2 %v148_v22  ;;  %476 = vmatpush.msrb.mxu1 %v339_v23  ;;  %v306_v8 = vld [vmem:[%s4080_s29 + $0x780] sm:$0xff]  ;;  %v2427_v9 = vld [vmem:[%s4081_s25 + $0x30] sm:$0xff] }
  0x38   :  { %518 = vmatpush.msrb.mxu3 %v94_v24  ;;  %457 = vmatpush.msrb.mxu0 %v288_v25  ;;  %v208_v10 = vld [vmem:[%s4080_s29 + $0x470] sm:$0xff] }
  0x39   :  { %537 = vmatpush.msra.mxu2 %v145_v26  ;;  %477 = vmatpush.msrb.mxu1 %v336_v27 }
  0x3a   :  { %519 = vmatpush.msrb.mxu3 %v91_v28  ;;  %458 = vmatpush.msrb.mxu0 %v285_v29 }
  0x3b   :  { %538 = vmatpush.msra.mxu2 %v142_v30  ;;  %478 = vmatpush.msrb.mxu1 %v333_v31 }
  0x3c   :  { %520 = vmatpush.msrb.mxu3 %v88_v32  ;;  %459 = vmatpush.msrb.mxu0 %v282_v33 }
  0x3d   :  { %539 = vmatpush.msra.mxu2 %v139_v34  ;;  %479 = vmatpush.msrb.mxu1 %v330_v35 }
  0x3e   :  { %521 = vmatpush.msrb.mxu3 %v85_v36  ;;  %460 = vmatpush.msrb.mxu0 %v279_v37 }
  0x3f   :  { %540 = vmatpush.msra.mxu2 %v136_v38  ;;  %480 = vmatpush.msrb.mxu1 %v327_v39 }
  0x40   :  { %522 = vmatpush.msrb.mxu3 %v82_v40  ;;  %461 = vmatpush.msrb.mxu0 %v276_v41 }
  0x41   :  { %541 = vmatpush.msra.mxu2 %v133_v42  ;;  %481 = vmatpush.msrb.mxu1 %v324_v43 }
  0x42   :  { %523 = vmatpush.msrb.mxu3 %v79_v44  ;;  %462 = vmatpush.msrb.mxu0 %v273_v45 }
  0x43   :  { %542 = vmatpush.msra.mxu2 %v130_v46  ;;  %482 = vmatpush.msrb.mxu1 %v321_v47 }
  0x44   :  { %524 = vmatpush.msrb.mxu3 %v76_v48  ;;  %463 = vmatpush.msrb.mxu0 %v270_v49 }
  0x45   :  { %543 = vmatpush.msra.mxu2 %v127_v50  ;;  %483 = vmatpush.msrb.mxu1 %v318_v51 }
  0x46   :  { %525 = vmatpush.msrb.mxu3 %v73_v52  ;;  %464 = vmatpush.msrb.mxu0 %v267_v53 }
  0x47   :  { %544 = vmatpush.msra.mxu2 %v124_v54  ;;  %484 = vmatpush.msrb.mxu1 %v315_v55 }
  0x48   :  { %526 = vmatpush.msrb.mxu3 %v70_v56  ;;  %388 = vmatmul.f32.vlgmr.msra.gmra.mxu0 %v2373_v57 }
  0x49   :  { %448 = vmatmul.f32.vlgmr.msra.gmra.mxu3 %v2378_v58  ;;  %465 = vmatpush.msrb.mxu0 %v264_v59 }
  0x4a   :  { %545 = vmatpush.msra.mxu2 %v121_v60  ;;  %485 = vmatpush.msrb.mxu1 %v312_v61 }
  0x4b   :  { %527 = vmatpush.msrb.mxu3 %v67_v62  ;;  %408 = vmatmul.f32.vlgmr.msra.gmra.mxu1 %v2396_v63 }
  0x4c   :  { %466 = vmatpush.msrb.mxu0 %v261_v0  ;;  %546 = vmatpush.msra.mxu2 %v118_v1 }
  0x4d   :  { %592 = vmatpush.msra.mxu3 %v304_v2  ;;  %486 = vmatpush.msrb.mxu1 %v309_v3 }
  0x4e   :  { %24 = vsyncpa [#allocation3], 0  ;;  %467 = vmatpush.msrb.mxu0 %v258_v5  ;;  %547 = vmatpush.msra.mxu2 %v115_v6  ;;  %v352_v11 = vld [vmem:[%s4080_s29 + $0x8f0] sm:$0xff]  ;;  %v298_v13 = vld [vmem:[%s4080_s29 + $0x740] sm:$0xff]  ;;  %s4082_s26 = sld [smem:[#allocation7_spill]]  ;;  %vm832_vm1 = vcmask 261120  }
  0x4f   :  { %v256_v12 = vld [vmem:[%s4080_s29 + $0x5f0] sm:$0xff]  ;;  %593 = vmatpush.msra.mxu3 %v301_v7  ;;  %487 = vmatpush.msrb.mxu1 %v306_v8  ;;  %v205_v14 = vld [vmem:[%s4080_s29 + $0x458] sm:$0xff]  ;;  %v2452_v16 = vld [vmem:[%s4081_s25 + $0x20] sm:$0xff]  ;;  %vm912_vm2 = vcmask 785408   ;;  %vm977_vm3 = vcmask 1041408   ;;  %vm967_vm4 = vcmask 15360  }
  0x50   :  { %1857 = vmatmul.msk.f32.vlgmr.msrb.gmra.mxu2 %vm368_vm0, %v2427_v9  ;;  %552 = vmatpush.msra.mxu0 %v208_v10  ;;  %v349_v15 = vld [vmem:[%s4080_s29 + $0x8d8] sm:$0xff]  ;;  %v295_v18 = vld [vmem:[%s4080_s29 + $0x728] sm:$0xff]  ;;  %v202_v19 = vld [vmem:[%s4080_s29 + $0x440] sm:$0xff] }
  0x51   :  { %612 = vmatpush.msrb.mxu2 %v352_v11  ;;  %572 = vmatpush.msra.mxu1 %v256_v12  ;;  %v253_v17 = vld [vmem:[%s4080_s29 + $0x5d8] sm:$0xff]  ;;  %v346_v20 = vld [vmem:[%s4080_s29 + $0x8c0] sm:$0xff]  ;;  %v2470_v21 = vld [vmem:[%s4081_s25 + $0x28] sm:$0xff] }
  0x52   :  { %594 = vmatpush.msra.mxu3 %v298_v13  ;;  %553 = vmatpush.msra.mxu0 %v205_v14  ;;  %v292_v22 = vld [vmem:[%s4080_s29 + $0x710] sm:$0xff]  ;;  %v250_v23 = vld [vmem:[%s4080_s29 + $0x5c0] sm:$0xff]  ;;  %v199_v24 = vld [vmem:[%s4080_s29 + $0x428] sm:$0xff] }
  0x53   :  { %613 = vmatpush.msrb.mxu2 %v349_v15  ;;  %468 = vmatmul.f32.vlgmr.msrb.gmra.mxu0 %v2452_v16  ;;  %v343_v25 = vld [vmem:[%s4080_s29 + $0x8a8] sm:$0xff]  ;;  %v289_v26 = vld [vmem:[%s4080_s29 + $0x6f8] sm:$0xff]  ;;  %v196_v28 = vld [vmem:[%s4080_s29 + $0x410] sm:$0xff] }
  0x54   :  { %573 = vmatpush.msra.mxu1 %v253_v17  ;;  %595 = vmatpush.msra.mxu3 %v295_v18  ;;  %v247_v27 = vld [vmem:[%s4080_s29 + $0x5a8] sm:$0xff]  ;;  %v340_v29 = vld [vmem:[%s4080_s29 + $0x890] sm:$0xff]  ;;  %v286_v30 = vld [vmem:[%s4080_s29 + $0x6e0] sm:$0xff] }
  0x55   :  { %554 = vmatpush.msra.mxu0 %v202_v19  ;;  %614 = vmatpush.msrb.mxu2 %v346_v20  ;;  %v244_v31 = vld [vmem:[%s4080_s29 + $0x590] sm:$0xff]  ;;  %v193_v32 = vld [vmem:[%s4080_s29 + $0x3f8] sm:$0xff]  ;;  %v283_v34 = vld [vmem:[%s4080_s29 + $0x6c8] sm:$0xff] }
  0x56   :  { %488 = vmatmul.f32.vlgmr.msrb.gmra.mxu1 %v2470_v21  ;;  %596 = vmatpush.msra.mxu3 %v292_v22  ;;  %v337_v33 = vld [vmem:[%s4080_s29 + $0x878] sm:$0xff]  ;;  %v190_v36 = vld [vmem:[%s4080_s29 + $0x3e0] sm:$0xff]  ;;  %v280_v38 = vld [vmem:[%s4080_s29 + $0x6b0] sm:$0xff] }
  0x57   :  { %574 = vmatpush.msra.mxu1 %v250_v23  ;;  %555 = vmatpush.msra.mxu0 %v199_v24  ;;  %v241_v35 = vld [vmem:[%s4080_s29 + $0x578] sm:$0xff]  ;;  %v334_v37 = vld [vmem:[%s4080_s29 + $0x860] sm:$0xff]  ;;  %v187_v40 = vld [vmem:[%s4080_s29 + $0x3c8] sm:$0xff] }
  0x58   :  { %615 = vmatpush.msrb.mxu2 %v343_v25  ;;  %597 = vmatpush.msra.mxu3 %v289_v26  ;;  %v238_v39 = vld [vmem:[%s4080_s29 + $0x560] sm:$0xff]  ;;  %v331_v41 = vld [vmem:[%s4080_s29 + $0x848] sm:$0xff]  ;;  %v277_v42 = vld [vmem:[%s4080_s29 + $0x698] sm:$0xff] }
  0x59   :  { %575 = vmatpush.msra.mxu1 %v247_v27  ;;  %556 = vmatpush.msra.mxu0 %v196_v28  ;;  %v235_v43 = vld [vmem:[%s4080_s29 + $0x548] sm:$0xff]  ;;  %v184_v44 = vld [vmem:[%s4080_s29 + $0x3b0] sm:$0xff]  ;;  %v274_v46 = vld [vmem:[%s4080_s29 + $0x680] sm:$0xff] }
  0x5a   :  { %616 = vmatpush.msrb.mxu2 %v340_v29  ;;  %598 = vmatpush.msra.mxu3 %v286_v30  ;;  %v328_v45 = vld [vmem:[%s4080_s29 + $0x830] sm:$0xff]  ;;  %v181_v48 = vld [vmem:[%s4080_s29 + $0x398] sm:$0xff]  ;;  %v271_v50 = vld [vmem:[%s4080_s29 + $0x668] sm:$0xff] }
  0x5b   :  { %576 = vmatpush.msra.mxu1 %v244_v31  ;;  %557 = vmatpush.msra.mxu0 %v193_v32  ;;  %v232_v47 = vld [vmem:[%s4080_s29 + $0x530] sm:$0xff]  ;;  %v325_v49 = vld [vmem:[%s4080_s29 + $0x818] sm:$0xff]  ;;  %v178_v52 = vld [vmem:[%s4080_s29 + $0x380] sm:$0xff] }
  0x5c   :  { %617 = vmatpush.msrb.mxu2 %v337_v33  ;;  %599 = vmatpush.msra.mxu3 %v283_v34  ;;  %v229_v51 = vld [vmem:[%s4080_s29 + $0x518] sm:$0xff]  ;;  %v322_v53 = vld [vmem:[%s4080_s29 + $0x800] sm:$0xff]  ;;  %v268_v55 = vld [vmem:[%s4080_s29 + $0x650] sm:$0xff] }
  0x5d   :  { %577 = vmatpush.msra.mxu1 %v241_v35  ;;  %558 = vmatpush.msra.mxu0 %v190_v36  ;;  %v226_v54 = vld [vmem:[%s4080_s29 + $0x500] sm:$0xff]  ;;  %v175_v56 = vld [vmem:[%s4080_s29 + $0x368] sm:$0xff]  ;;  %v265_v61 = vld [vmem:[%s4080_s29 + $0x638] sm:$0xff] }
  0x5e   :  { %618 = vmatpush.msrb.mxu2 %v334_v37  ;;  %600 = vmatpush.msra.mxu3 %v280_v38  ;;  %v319_v59 = vld [vmem:[%s4080_s29 + $0x7e8] sm:$0xff]  ;;  %v172_v62 = vld [vmem:[%s4080_s29 + $0x350] sm:$0xff]  ;;  %v262_v2 = vld [vmem:[%s4080_s29 + $0x620] sm:$0xff] }
  0x5f   :  { %578 = vmatpush.msra.mxu1 %v238_v39  ;;  %559 = vmatpush.msra.mxu0 %v187_v40  ;;  %v223_v60 = vld [vmem:[%s4080_s29 + $0x4e8] sm:$0xff]  ;;  %v316_v0 = vld [vmem:[%s4080_s29 + $0x7d0] sm:$0xff]  ;;  %v169_v3 = vld [vmem:[%s4080_s29 + $0x338] sm:$0xff] }
  0x60   :  { %619 = vmatpush.msrb.mxu2 %v331_v41  ;;  %601 = vmatpush.msra.mxu3 %v277_v42  ;;  %v220_v1 = vld [vmem:[%s4080_s29 + $0x4d0] sm:$0xff]  ;;  %v313_v5 = vld [vmem:[%s4080_s29 + $0x7b8] sm:$0xff]  ;;  %v259_v7 = vld [vmem:[%s4080_s29 + $0x608] sm:$0xff] }
  0x61   :  { %579 = vmatpush.msra.mxu1 %v235_v43  ;;  %560 = vmatpush.msra.mxu0 %v184_v44  ;;  %v217_v6 = vld [vmem:[%s4080_s29 + $0x4b8] sm:$0xff]  ;;  %v166_v8 = vld [vmem:[%s4080_s29 + $0x320] sm:$0xff]  ;;  %v163_v13 = vld [vmem:[%s4080_s29 + $0x308] sm:$0xff] }
  0x62   :  { %620 = vmatpush.msrb.mxu2 %v328_v45  ;;  %602 = vmatpush.msra.mxu3 %v274_v46  ;;  %v310_v10 = vld [vmem:[%s4080_s29 + $0x7a0] sm:$0xff]  ;;  %v161_v11 = vld [vmem:[%s4080_s29 + $0x2f8] sm:$0xff]  ;;  %v307_v14 = vld [vmem:[%s4080_s29 + $0x788] sm:$0xff] }
  0x63   :  { %580 = vmatpush.msra.mxu1 %v232_v47  ;;  %561 = vmatpush.msra.mxu0 %v181_v48  ;;  %v214_v12 = vld [vmem:[%s4080_s29 + $0x4a0] sm:$0xff]  ;;  %v211_v17 = vld [vmem:[%s4080_s29 + $0x488] sm:$0xff]  ;;  %v113_v18 = vld [vmem:[%s4080_s29 + $0x178] sm:$0xff] }
  0x64   :  { %621 = vmatpush.msrb.mxu2 %v325_v49  ;;  %603 = vmatpush.msra.mxu3 %v271_v50  ;;  %v158_v15 = vld [vmem:[%s4080_s29 + $0x2e0] sm:$0xff]  ;;  %v155_v19 = vld [vmem:[%s4080_s29 + $0x2c8] sm:$0xff]  ;;  %v152_v23 = vld [vmem:[%s4080_s29 + $0x2b0] sm:$0xff] }
  0x65   :  { %581 = vmatpush.msra.mxu1 %v229_v51  ;;  %562 = vmatpush.msra.mxu0 %v178_v52  ;;  %v358_v20 = vld [vmem:[%s4080_s29 + $0x920] sm:$0xff]  ;;  %v355_v24 = vld [vmem:[%s4080_s29 + $0x908] sm:$0xff]  ;;  %v257_v25 = vld [vmem:[%s4080_s29 + $0x5f8] sm:$0xff] }
  0x66   :  { %622 = vmatpush.msrb.mxu2 %v322_v53  ;;  %528 = vmatmul.f32.vlgmr.msrb.gmra.mxu3 %v2373_v57  ;;  %v110_v22 = vld [vmem:[%s4080_s29 + $0x160] sm:$0xff]  ;;  %v107_v26 = vld [vmem:[%s4080_s29 + $0x148] sm:$0xff]  ;;  %v149_v27 = vld [vmem:[%s4080_s29 + $0x298] sm:$0xff] }
  0x67   :  { %582 = vmatpush.msra.mxu1 %v226_v54  ;;  %604 = vmatpush.msra.mxu3 %v268_v55  ;;  %v254_v28 = vld [vmem:[%s4080_s29 + $0x5e0] sm:$0xff]  ;;  %v209_v29 = vld [vmem:[%s4080_s29 + $0x478] sm:$0xff]  ;;  %v104_v30 = vld [vmem:[%s4080_s29 + $0x130] sm:$0xff] }
  0x68   :  { %563 = vmatpush.msra.mxu0 %v175_v56  ;;  %623 = vmatpush.msrb.mxu2 %v319_v59  ;;  %v146_v31 = vld [vmem:[%s4080_s29 + $0x280] sm:$0xff]  ;;  %v251_v32 = vld [vmem:[%s4080_s29 + $0x5c8] sm:$0xff]  ;;  %v101_v33 = vld [vmem:[%s4080_s29 + $0x118] sm:$0xff] }
  0x69   :  { %548 = vmatmul.f32.vlgmr.msra.gmra.mxu2 %v2396_v63  ;;  %583 = vmatpush.msra.mxu1 %v223_v60  ;;  %v143_v34 = vld [vmem:[%s4080_s29 + $0x268] sm:$0xff]  ;;  %v206_v35 = vld [vmem:[%s4080_s29 + $0x460] sm:$0xff]  ;;  %v248_v36 = vld [vmem:[%s4080_s29 + $0x5b0] sm:$0xff] }
  0x6a   :  { %605 = vmatpush.msra.mxu3 %v265_v61  ;;  %564 = vmatpush.msra.mxu0 %v172_v62  ;;  %v98_v37 = vld [vmem:[%s4080_s29 + $0x100] sm:$0xff]  ;;  %v140_v38 = vld [vmem:[%s4080_s29 + $0x250] sm:$0xff]  ;;  %v203_v39 = vld [vmem:[%s4080_s29 + $0x448] sm:$0xff] }
  0x6b   :  { %624 = vmatpush.msrb.mxu2 %v316_v0  ;;  %584 = vmatpush.msra.mxu1 %v220_v1  ;;  %v245_v40 = vld [vmem:[%s4080_s29 + $0x598] sm:$0xff]  ;;  %v95_v41 = vld [vmem:[%s4080_s29 + $0xe8] sm:$0xff]  ;;  %v200_v43 = vld [vmem:[%s4080_s29 + $0x430] sm:$0xff] }
  0x6c   :  { %606 = vmatpush.msra.mxu3 %v262_v2  ;;  %565 = vmatpush.msra.mxu0 %v169_v3  ;;  %v137_v42 = vld [vmem:[%s4080_s29 + $0x238] sm:$0xff]  ;;  %v242_v44 = vld [vmem:[%s4080_s29 + $0x580] sm:$0xff]  ;;  %v92_v45 = vld [vmem:[%s4080_s29 + $0xd0] sm:$0xff] }
  0x6d   :  { %625 = vmatpush.msrb.mxu2 %v313_v5  ;;  %585 = vmatpush.msra.mxu1 %v217_v6  ;;  %v134_v46 = vld [vmem:[%s4080_s29 + $0x220] sm:$0xff]  ;;  %v197_v47 = vld [vmem:[%s4080_s29 + $0x418] sm:$0xff]  ;;  %v239_v48 = vld [vmem:[%s4080_s29 + $0x568] sm:$0xff] }
  0x6e   :  { %607 = vmatpush.msra.mxu3 %v259_v7  ;;  %566 = vmatpush.msra.mxu0 %v166_v8  ;;  %v89_v49 = vld [vmem:[%s4080_s29 + $0xb8] sm:$0xff]  ;;  %v131_v50 = vld [vmem:[%s4080_s29 + $0x208] sm:$0xff]  ;;  %v194_v51 = vld [vmem:[%s4080_s29 + $0x400] sm:$0xff] }
  0x6f   :  { %626 = vmatpush.msrb.mxu2 %v310_v10  ;;  %586 = vmatpush.msra.mxu1 %v214_v12  ;;  %v236_v52 = vld [vmem:[%s4080_s29 + $0x550] sm:$0xff]  ;;  %v86_v53 = vld [vmem:[%s4080_s29 + $0xa0] sm:$0xff]  ;;  %v191_v55 = vld [vmem:[%s4080_s29 + $0x3e8] sm:$0xff] }
  0x70   :  { %672 = vmatpush.msrb.mxu3 %v161_v11  ;;  %567 = vmatpush.msra.mxu0 %v163_v13  ;;  %v128_v54 = vld [vmem:[%s4080_s29 + $0x1f0] sm:$0xff]  ;;  %v233_v56 = vld [vmem:[%s4080_s29 + $0x538] sm:$0xff]  ;;  %v83_v59 = vld [vmem:[%s4080_s29 + $0x88] sm:$0xff] }
  0x71   :  { %608 = vmatmul.f32.vlgmr.msra.gmra.mxu3 %v2452_v16  ;;  %627 = vmatpush.msrb.mxu2 %v307_v14  ;;  %v125_v60 = vld [vmem:[%s4080_s29 + $0x1d8] sm:$0xff]  ;;  %v188_v61 = vld [vmem:[%s4080_s29 + $0x3d0] sm:$0xff]  ;;  %v230_v62 = vld [vmem:[%s4080_s29 + $0x520] sm:$0xff] }
  0x72   :  { %673 = vmatpush.msrb.mxu3 %v158_v15  ;;  %568 = vmatmul.f32.vlgmr.msra.gmra.mxu0 %v2211_v4  ;;  %v80_v0 = vld [vmem:[%s4080_s29 + $0x70] sm:$0xff]  ;;  %v122_v1 = vld [vmem:[%s4080_s29 + $0x1c0] sm:$0xff]  ;;  %v185_v2 = vld [vmem:[%s4080_s29 + $0x3b8] sm:$0xff] }
  0x73   :  { %587 = vmatpush.msra.mxu1 %v211_v17  ;;  %628 = vmatmul.f32.vlgmr.msrb.gmra.mxu2 %v2470_v21  ;;  %v227_v3 = vld [vmem:[%s4080_s29 + $0x508] sm:$0xff]  ;;  %v77_v5 = vld [vmem:[%s4080_s29 + $0x58] sm:$0xff]  ;;  %v182_v7 = vld [vmem:[%s4080_s29 + $0x3a0] sm:$0xff] }
  0x74   :  { %674 = vmatpush.msrb.mxu3 %v155_v19  ;;  %588 = vmatmul.f32.vlgmr.msra.gmra.mxu1 %v2378_v58  ;;  %v119_v6 = vld [vmem:[%s4080_s29 + $0x1a8] sm:$0xff]  ;;  %v224_v8 = vld [vmem:[%s4080_s29 + $0x4f0] sm:$0xff]  ;;  %v74_v10 = vld [vmem:[%s4080_s29 + $0x40] sm:$0xff] }
  0x75   :  { %652 = vmatpush.msrb.mxu1 %v113_v18  ;;  %646 = vmatpush.msrb.mxu0 %v358_v20  ;;  %v116_v11 = vld [vmem:[%s4080_s29 + $0x190] sm:$0xff]  ;;  %v353_v12 = vld [vmem:[%s4080_s29 + $0x8f8] sm:$0xff]  ;;  %v179_v13 = vld [vmem:[%s4080_s29 + $0x388] sm:$0xff] }
  0x76   :  { %675 = vmatpush.msrb.mxu3 %v152_v23  ;;  %712 = vmatpush.msra.mxu2 %v257_v25  ;;  %v71_v14 = vld [vmem:[%s4080_s29 + $0x28] sm:$0xff]  ;;  %v221_v15 = vld [vmem:[%s4080_s29 + $0x4d8] sm:$0xff]  ;;  %v350_v17 = vld [vmem:[%s4080_s29 + $0x8e0] sm:$0xff] }
  0x77   :  { %653 = vmatpush.msrb.mxu1 %v110_v22  ;;  %647 = vmatpush.msrb.mxu0 %v355_v24  ;;  %v176_v18 = vld [vmem:[%s4080_s29 + $0x370] sm:$0xff]  ;;  %v218_v20 = vld [vmem:[%s4080_s29 + $0x4c0] sm:$0xff]  ;;  %v305_v22 = vld [vmem:[%s4080_s29 + $0x778] sm:$0xff] }
  0x78   :  { %676 = vmatpush.msrb.mxu3 %v149_v27  ;;  %713 = vmatpush.msra.mxu2 %v254_v28  ;;  %v68_v19 = vld [vmem:[%s4080_s29 + $0x10] sm:$0xff]  ;;  %v347_v23 = vld [vmem:[%s4080_s29 + $0x8c8] sm:$0xff]  ;;  %v173_v24 = vld [vmem:[%s4080_s29 + $0x358] sm:$0xff] }
  0x79   :  { %654 = vmatpush.msrb.mxu1 %v107_v26  ;;  %692 = vmatpush.msra.mxu0 %v209_v29  ;;  %v302_v25 = vld [vmem:[%s4080_s29 + $0x760] sm:$0xff]  ;;  %v344_v26 = vld [vmem:[%s4080_s29 + $0x8b0] sm:$0xff]  ;;  %v215_v27 = vld [vmem:[%s4080_s29 + $0x4a8] sm:$0xff] }
  0x7a   :  { %677 = vmatpush.msrb.mxu3 %v146_v31  ;;  %1858 = vmatmul.msk.f32.vlgmr.msrb.gmra.mxu0 %vm368_vm0, %v2427_v9  ;;  %v170_v28 = vld [vmem:[%s4080_s29 + $0x340] sm:$0xff]  ;;  %v299_v29 = vld [vmem:[%s4080_s29 + $0x748] sm:$0xff]  ;;  %v212_v31 = vld [vmem:[%s4080_s29 + $0x490] sm:$0xff] }
  0x7b   :  { %655 = vmatpush.msrb.mxu1 %v104_v30  ;;  %714 = vmatpush.msra.mxu2 %v251_v32  ;;  %v341_v30 = vld [vmem:[%s4080_s29 + $0x898] sm:$0xff]  ;;  %v296_v32 = vld [vmem:[%s4080_s29 + $0x730] sm:$0xff] }
  0x7c   :  { %678 = vmatpush.msrb.mxu3 %v143_v34  ;;  %693 = vmatpush.msra.mxu0 %v206_v35  ;;  %v293_v34 = vld [vmem:[%s4080_s29 + $0x718] sm:$0xff]  ;;  %v335_v35 = vld [vmem:[%s4080_s29 + $0x868] sm:$0xff] }
  0x7d   :  { %656 = vmatpush.msrb.mxu1 %v101_v33  ;;  %715 = vmatpush.msra.mxu2 %v248_v36  ;;  %v338_v33 = vld [vmem:[%s4080_s29 + $0x880] sm:$0xff]  ;;  %v164_v36 = vld [vmem:[%s4080_s29 + $0x310] sm:$0xff] }
  0x7e   :  { %679 = vmatpush.msrb.mxu3 %v140_v38  ;;  %694 = vmatpush.msra.mxu0 %v203_v39  ;;  %v290_v38 = vld [vmem:[%s4080_s29 + $0x700] sm:$0xff]  ;;  %v332_v39 = vld [vmem:[%s4080_s29 + $0x850] sm:$0xff] }
  0x7f   :  { %657 = vmatpush.msrb.mxu1 %v98_v37  ;;  %716 = vmatpush.msra.mxu2 %v245_v40  ;;  %v807_v37 = vld [vmem:[%s4059_s3 + $0x78] sm:$0xff]  ;;  %v287_v40 = vld [vmem:[%s4080_s29 + $0x6e8] sm:$0xff] }
  0x80   :  { %680 = vmatpush.msrb.mxu3 %v137_v42  ;;  %695 = vmatpush.msra.mxu0 %v200_v43  ;;  %v805_v42 = vld [vmem:[%s4059_s3 + $0x68] sm:$0xff]  ;;  %v284_v43 = vld [vmem:[%s4080_s29 + $0x6d0] sm:$0xff] }
  0x81   :  { %658 = vmatpush.msrb.mxu1 %v95_v41  ;;  %717 = vmatpush.msra.mxu2 %v242_v44  ;;  %v329_v41 = vld [vmem:[%s4080_s29 + $0x838] sm:$0xff]  ;;  %v326_v44 = vld [vmem:[%s4080_s29 + $0x820] sm:$0xff] }
  0x82   :  { %681 = vmatpush.msrb.mxu3 %v134_v46  ;;  %696 = vmatpush.msra.mxu0 %v197_v47  ;;  %v804_v46 = vld [vmem:[%s4059_s3 + $0x60] sm:$0xff]  ;;  %v281_v47 = vld [vmem:[%s4080_s29 + $0x6b8] sm:$0xff] }
  0x83   :  { %659 = vmatpush.msrb.mxu1 %v92_v45  ;;  %718 = vmatpush.msra.mxu2 %v239_v48  ;;  %v356_v45 = vld [vmem:[%s4080_s29 + $0x910] sm:$0xff]  ;;  %v323_v48 = vld [vmem:[%s4080_s29 + $0x808] sm:$0xff] }
  0x84   :  { %682 = vmatpush.msrb.mxu3 %v131_v50  ;;  %697 = vmatpush.msra.mxu0 %v194_v51  ;;  %v320_v50 = vld [vmem:[%s4080_s29 + $0x7f0] sm:$0xff] }
  0x85   :  { %660 = vmatpush.msrb.mxu1 %v89_v49  ;;  %719 = vmatpush.msra.mxu2 %v236_v52  ;;  %v278_v49 = vld [vmem:[%s4080_s29 + $0x6a0] sm:$0xff]  ;;  %v802_v51 = vld [vmem:[%s4059_s3 + $0x50] sm:$0xff]  ;;  %v275_v52 = vld [vmem:[%s4080_s29 + $0x688] sm:$0xff] }
  0x86   :  { %683 = vmatpush.msrb.mxu3 %v128_v54  ;;  %698 = vmatpush.msra.mxu0 %v191_v55  ;;  %v801_v54 = vld [vmem:[%s4059_s3 + $0x48] sm:$0xff]  ;;  %v272_v55 = vld [vmem:[%s4080_s29 + $0x670] sm:$0xff] }
  0x87   :  { %661 = vmatpush.msrb.mxu1 %v86_v53  ;;  %720 = vmatpush.msra.mxu2 %v233_v56  ;;  %v317_v53 = vld [vmem:[%s4080_s29 + $0x7d8] sm:$0xff]  ;;  %v314_v56 = vld [vmem:[%s4080_s29 + $0x7c0] sm:$0xff] }
  0x88   :  { %684 = vmatpush.msrb.mxu3 %v125_v60  ;;  %699 = vmatpush.msra.mxu0 %v188_v61  ;;  %v269_v60 = vld [vmem:[%s4080_s29 + $0x658] sm:$0xff]  ;;  %v311_v61 = vld [vmem:[%s4080_s29 + $0x7a8] sm:$0xff] }
  0x89   :  { %662 = vmatpush.msrb.mxu1 %v83_v59  ;;  %721 = vmatpush.msra.mxu2 %v230_v62  ;;  %v800_v59 = vld [vmem:[%s4059_s3 + $0x40] sm:$0xff] }
  0x8a   :  { %685 = vmatpush.msrb.mxu3 %v122_v1  ;;  %700 = vmatpush.msra.mxu0 %v185_v2  ;;  %v266_v62 = vld [vmem:[%s4080_s29 + $0x640] sm:$0xff]  ;;  %v798_v1 = vld [vmem:[%s4059_s3 + $0x30] sm:$0xff]  ;;  %v263_v2 = vld [vmem:[%s4080_s29 + $0x628] sm:$0xff] }
  0x8b   :  { %663 = vmatpush.msrb.mxu1 %v80_v0  ;;  %722 = vmatpush.msra.mxu2 %v227_v3  ;;  %v308_v0 = vld [vmem:[%s4080_s29 + $0x790] sm:$0xff]  ;;  %v797_v3 = vld [vmem:[%s4059_s3 + $0x28] sm:$0xff] }
  0x8c   :  { %686 = vmatpush.msrb.mxu3 %v119_v6  ;;  %701 = vmatpush.msra.mxu0 %v182_v7  ;;  %v796_v6 = vld [vmem:[%s4059_s3 + $0x20] sm:$0xff]  ;;  %v795_v7 = vld [vmem:[%s4059_s3 + $0x18] sm:$0xff] }
  0x8d   :  { %664 = vmatpush.msrb.mxu1 %v77_v5  ;;  %723 = vmatpush.msra.mxu2 %v224_v8  ;;  %v260_v5 = vld [vmem:[%s4080_s29 + $0x610] sm:$0xff]  ;;  %v793_v8 = vld [vmem:[%s4059_s3 + $0x8] sm:$0xff] }
  0x8e   :  { %687 = vmatpush.msrb.mxu3 %v116_v11  ;;  %702 = vmatpush.msra.mxu0 %v179_v13  ;;  %v822_v11 = vld [vmem:[%s4059_s3 + $0xf0] sm:$0xff]  ;;  %v820_v13 = vld [vmem:[%s4059_s3 + $0xe0] sm:$0xff] }
  0x8f   :  { %665 = vmatpush.msrb.mxu1 %v74_v10  ;;  %724 = vmatpush.msra.mxu2 %v221_v15  ;;  %v792_v10 = vld [vmem:[%s4059_s3] sm:$0xff] }
  0x90   :  { %752 = vmatpush.msra.mxu3 %v353_v12  ;;  %703 = vmatpush.msra.mxu0 %v176_v18  ;;  %v821_v12 = vld [vmem:[%s4059_s3 + $0xe8] sm:$0xff]  ;;  %v3011_v15 = vld [vmem:[%s4082_s26] sm:$0x7] }
  0x91   :  { %666 = vmatpush.msrb.mxu1 %v71_v14  ;;  %725 = vmatpush.msra.mxu2 %v218_v20  ;;  %v819_v14 = vld [vmem:[%s4059_s3 + $0xd8] sm:$0xff]  ;;  %v362_v18 = vperm.slane %v3011_v15, 0  ;;  %v816_v20 = vld [vmem:[%s4059_s3 + $0xc0] sm:$0xff] }
  0x92   :  { %753 = vmatpush.msra.mxu3 %v350_v17  ;;  %704 = vmatpush.msra.mxu0 %v173_v24  ;;  %v818_v17 = vld [vmem:[%s4059_s3 + $0xd0] sm:$0xff] }
  0x93   :  { %667 = vmatpush.msrb.mxu1 %v68_v19  ;;  %688 = vmatmul.f32.vlgmr.msrb.gmra.mxu3 %v2396_v63  ;;  %v167_v63 = vld [vmem:[%s4080_s29 + $0x328] sm:$0xff] }
  0x94   :  { %754 = vmatpush.msra.mxu3 %v347_v23  ;;  %726 = vmatpush.msra.mxu2 %v215_v27  ;;  %v817_v19 = vld [vmem:[%s4059_s3 + $0xc8] sm:$0xff]  ;;  %v815_v27 = vld [vmem:[%s4059_s3 + $0xb8] sm:$0xff] }
  0x95   :  { %732 = vmatpush.msra.mxu1 %v305_v22  ;;  %705 = vmatpush.msra.mxu0 %v170_v28 }
  0x96   :  { %755 = vmatpush.msra.mxu3 %v344_v26  ;;  %727 = vmatpush.msra.mxu2 %v212_v31  ;;  %v814_v31 = vld [vmem:[%s4059_s3 + $0xb0] sm:$0xff] }
  0x97   :  { %733 = vmatpush.msra.mxu1 %v302_v25  ;;  %728 = vmatmul.f32.vlgmr.msra.gmra.mxu2 %v2378_v58  ;;  %v359_v58 = vld [vmem:[%s4080_s29 + $0x928] sm:$0xff] }
  0x98   :  { %756 = vmatpush.msra.mxu3 %v341_v30  ;;  %668 = vmatmul.f32.vlgmr.msrb.gmra.mxu1 %v2373_v57  ;;  %v806_v57 = vld [vmem:[%s4059_s3 + $0x70] sm:$0xff] }
  0x99   :  { %734 = vmatpush.msra.mxu1 %v299_v29  ;;  %706 = vmatpush.msra.mxu0 %v167_v63 }
  0x9a   :  { %757 = vmatpush.msra.mxu3 %v338_v33  ;;  %836 = vmatpush.msrb.mxu2 %v807_v37  ;;  %v811_v37 = vld [vmem:[%s4059_s3 + $0x98] sm:$0xff] }
  0x9b   :  { %735 = vmatpush.msra.mxu1 %v296_v32  ;;  %707 = vmatpush.msra.mxu0 %v164_v36  ;;  %v813_v32 = vld [vmem:[%s4059_s3 + $0xa8] sm:$0xff] }
  0x9c   :  { %758 = vmatpush.msra.mxu3 %v335_v35  ;;  %708 = vmatmul.f32.vlgmr.msra.gmra.mxu0 %v2211_v4  ;;  %v803_v4 = vld [vmem:[%s4059_s3 + $0x58] sm:$0xff] }
  0x9d   :  { %736 = vmatpush.msra.mxu1 %v293_v34  ;;  %837 = vmatpush.msrb.mxu2 %v806_v57  ;;  %v812_v34 = vld [vmem:[%s4059_s3 + $0xa0] sm:$0xff] }
  0x9e   :  { %759 = vmatpush.msra.mxu3 %v332_v39  ;;  %786 = vmatpush.msrb.mxu0 %v359_v58  ;;  %v810_v39 = vld [vmem:[%s4059_s3 + $0x90] sm:$0xff]  ;;  %v363_v58 = vperm.slane %v3011_v15, 1 }
  0x9f   :  { %737 = vmatpush.msra.mxu1 %v290_v38  ;;  %838 = vmatpush.msrb.mxu2 %v805_v42 }
  0xa0   :  { %760 = vmatpush.msra.mxu3 %v329_v41  ;;  %787 = vmatpush.msrb.mxu0 %v356_v45  ;;  %v808_v41 = vld [vmem:[%s4059_s3 + $0x80] sm:$0xff] }
  0xa1   :  { %738 = vmatpush.msra.mxu1 %v287_v40  ;;  %839 = vmatpush.msrb.mxu2 %v804_v46  ;;  %v809_v40 = vld [vmem:[%s4059_s3 + $0x88] sm:$0xff] }
  0xa2   :  { %761 = vmatpush.msra.mxu3 %v326_v44 }
  0xa3   :  { %739 = vmatpush.msra.mxu1 %v284_v43  ;;  %840 = vmatpush.msrb.mxu2 %v803_v4 }
  0xa4   :  { %762 = vmatpush.msra.mxu3 %v323_v48  ;;  %1859 = vmatmul.msk.f32.vlgmr.msrb.gmra.mxu0 %vm368_vm0, %v2427_v9  ;;  %v799_v9 = vld [vmem:[%s4059_s3 + $0x38] sm:$0xff] }
  0xa5   :  { %740 = vmatpush.msra.mxu1 %v281_v47  ;;  %841 = vmatpush.msrb.mxu2 %v802_v51 }
  0xa6   :  { %763 = vmatpush.msra.mxu3 %v320_v50 }
  0xa7   :  { %741 = vmatpush.msra.mxu1 %v278_v49  ;;  %842 = vmatpush.msrb.mxu2 %v801_v54 }
  0xa8   :  { %764 = vmatpush.msra.mxu3 %v317_v53 }
  0xa9   :  { %742 = vmatpush.msra.mxu1 %v275_v52  ;;  %843 = vmatpush.msrb.mxu2 %v800_v59  ;;  %v825_v59 = vld [vmem:[%s4059_s3 + $0x108] sm:$0xff] }
  0xaa   :  { %765 = vmatpush.msra.mxu3 %v314_v56  ;;  %v826_v56 = vld [vmem:[%s4059_s3 + $0x110] sm:$0xff] }
  0xab   :  { %743 = vmatpush.msra.mxu1 %v272_v55  ;;  %844 = vmatpush.msrb.mxu2 %v799_v9  ;;  %v827_v55 = vld [vmem:[%s4059_s3 + $0x118] sm:$0xff] }
  0xac   :  { %766 = vmatpush.msra.mxu3 %v311_v61  ;;  %v364_v61 = vperm.slane %v3011_v15, 2  ;;  %v904_v15 = vld [vmem:[%s4061_s5 + $0x40] sm:$0xff] }
  0xad   :  { %744 = vmatpush.msra.mxu1 %v269_v60  ;;  %845 = vmatpush.msrb.mxu2 %v798_v1  ;;  %v824_v60 = vld [vmem:[%s4059_s3 + $0x100] sm:$0xff] }
  0xae   :  { %767 = vmatpush.msra.mxu3 %v308_v0 }
  0xaf   :  { %745 = vmatpush.msra.mxu1 %v266_v62  ;;  %768 = vmatmul.f32.vlgmr.msra.gmra.mxu3 %v2470_v21  ;;  %v794_v21 = vld [vmem:[%s4059_s3 + $0x10] sm:$0xff] }
  0xb0   :  { %846 = vmatpush.msrb.mxu2 %v797_v3 }
  0xb1   :  { %746 = vmatpush.msra.mxu1 %v263_v2  ;;  %v429_v25 = vpop.f32.mrf.mxu2 }
  0xb2   :  { %847 = vmatpush.msrb.mxu2 %v796_v6 }
  0xb3   :  { %747 = vmatpush.msra.mxu1 %v260_v5 }
  0xb4   :  { %748 = vmatmul.f32.vlgmr.msra.gmra.mxu1 %v2452_v16  ;;  %848 = vmatpush.msrb.mxu2 %v795_v7  ;;  %v823_v16 = vld [vmem:[%s4059_s3 + $0xf8] sm:$0xff] }
  0xb5   :  { %856 = vmatpush.msra.mxu0 %v823_v16 }
  0xb6   :  { %849 = vmatpush.msrb.mxu2 %v794_v21 }
  0xb7   :  { %857 = vmatpush.msra.mxu0 %v822_v11 }
  0xb8   :  { %850 = vmatpush.msrb.mxu2 %v793_v8 }
  0xb9   :  { %858 = vmatpush.msra.mxu0 %v821_v12  ;;  %v907_v12 = vld [vmem:[%s4061_s5 + $0x58] sm:$0xff] }
  0xba   :  { %851 = vmatpush.msrb.mxu2 %v792_v10  ;;  %920 = vmatpush.msrb.mxu3 %v907_v12  ;;  %v1880_v12 = vld [vmem:[%s4066_s10] ss:$0 sm:$0xff] }
  0xbb   :  { %859 = vmatpush.msra.mxu0 %v820_v13  ;;  %v906_v13 = vld [vmem:[%s4061_s5 + $0x50] sm:$0xff] }
  0xbc   :  { %888 = vmatpush.msra.mxu2 %v827_v55  ;;  %921 = vmatpush.msrb.mxu3 %v906_v13  ;;  %v1058_v55 = vld [vmem:[%s4069_s13 + $0xd0] sm:$0xff] }
  0xbd   :  { %860 = vmatpush.msra.mxu0 %v819_v14  ;;  %v905_v14 = vld [vmem:[%s4061_s5 + $0x48] sm:$0xff] }
  0xbe   :  { %889 = vmatpush.msra.mxu2 %v826_v56  ;;  %922 = vmatpush.msrb.mxu3 %v905_v14  ;;  %v1053_v56 = vld [vmem:[%s4069_s13 + $0xa8] sm:$0xff] }
  0xbf   :  { %861 = vmatpush.msra.mxu0 %v818_v17  ;;  %v903_v17 = vld [vmem:[%s4061_s5 + $0x38] sm:$0xff] }
  0xc0   :  { %890 = vmatpush.msra.mxu2 %v825_v59  ;;  %923 = vmatpush.msrb.mxu3 %v904_v15  ;;  %v1054_v59 = vld [vmem:[%s4069_s13 + $0xb0] sm:$0xff]  ;;  %v1035_v15 = vld [vmem:[%s4069_s13 + $0x18] sm:$0xff] }
  0xc1   :  { %862 = vmatpush.msra.mxu0 %v817_v19  ;;  %v901_v19 = vld [vmem:[%s4061_s5 + $0x28] sm:$0xff] }
  0xc2   :  { %891 = vmatpush.msra.mxu2 %v824_v60  ;;  %924 = vmatpush.msrb.mxu3 %v903_v17  ;;  %v1055_v60 = vld [vmem:[%s4069_s13 + $0xb8] sm:$0xff]  ;;  %v1036_v17 = vld [vmem:[%s4069_s13 + $0x20] sm:$0xff] }
  0xc3   :  { %863 = vmatpush.msra.mxu0 %v816_v20  ;;  %v900_v20 = vld [vmem:[%s4061_s5 + $0x20] sm:$0xff] }
  0xc5   :  { %v389_v22 = vpop.f32.mrf.mxu0  ;;  %864 = vmatpush.msra.mxu0 %v815_v27  ;;  %v938_v27 = vld [vmem:[%s4063_s7 + $0x10] sm:$0xff] }
  0xc6   :  { %v390_v23 = vadd.f32 %v389_v22, %v362_v18  ;;  %v902_v18 = vld [vmem:[%s4061_s5 + $0x30] sm:$0xff]  ;;  %v899_v22 = vld [vmem:[%s4061_s5 + $0x18] sm:$0xff] }
  0xc7   :  { %865 = vmatpush.msra.mxu0 %v814_v31  ;;  %925 = vmatpush.msrb.mxu3 %v902_v18  ;;  %v1037_v18 = vld [vmem:[%s4069_s13 + $0x28] sm:$0xff] }
  0xc8   :  { %v409_v24 = vpop.f32.mrf.mxu1 }
  0xc9   :  { %v410_v26 = vadd.f32 %v409_v24, %v390_v23  ;;  %866 = vmatpush.msra.mxu0 %v813_v32  ;;  %926 = vmatpush.msrb.mxu3 %v901_v19  ;;  %v898_v23 = vld [vmem:[%s4061_s5 + $0x10] sm:$0xff]  ;;  %v897_v24 = vld [vmem:[%s4061_s5 + $0x8] sm:$0xff]  ;;  %v1032_v19 = vld [vmem:[%s4069_s13] sm:$0xff] }
  0xcb   :  { %v430_v28 = vadd.f32 %v429_v25, %v410_v26  ;;  %867 = vmatpush.msra.mxu0 %v812_v34  ;;  %927 = vmatpush.msrb.mxu3 %v900_v20  ;;  %v896_v25 = vld [vmem:[%s4061_s5] sm:$0xff]  ;;  %v939_v26 = vld [vmem:[%s4063_s7 + $0x18] sm:$0xff]  ;;  %v937_v34 = vld [vmem:[%s4063_s7 + $0x8] sm:$0xff] }
  0xcc   :  { %v449_v29 = vpop.f32.mrf.mxu3  ;;  %959 = vmatpush.msrb.mxu1 %v939_v26  ;;  %v1033_v20 = vld [vmem:[%s4069_s13 + $0x8] sm:$0xff] }
  0xcd   :  { %v450_v30 = vadd.f32 %v449_v29, %v430_v28  ;;  %868 = vmatpush.msra.mxu0 %v811_v37  ;;  %928 = vmatpush.msrb.mxu3 %v899_v22  ;;  %v1877_v29 = vld [vmem:[%s4060_s4] ss:$0 sm:$0xff]  ;;  %v1034_v22 = vld [vmem:[%s4069_s13 + $0x10] sm:$0xff]  ;;  %v1244_v26 = vld [vmem:[%s4071_s15 + $0x348] sm:$0xff] }
  0xce   :  { %960 = vmatpush.msrb.mxu1 %v938_v27  ;;  %v1384_v27 = vld [vmem:[%s4071_s15 + $0x7a8] sm:$0xff] }
  0xcf   :  { %869 = vmatpush.msra.mxu0 %v810_v39  ;;  %929 = vmatpush.msrb.mxu3 %v898_v23  ;;  %v969_v39 = vld [vmem:[%s4065_s9] sm:$0x3]  ;;  %v1356_v23 = vld [vmem:[%s4071_s15 + $0x6c8] sm:$0xff] }
  0xd0   :  { %v469_v33 = vpop.f32.mrf.mxu0  ;;  %961 = vmatpush.msrb.mxu1 %v937_v34  ;;  %v1370_v34 = vld [vmem:[%s4071_s15 + $0x738] sm:$0xff] }
  0xd1   :  { %v470_v63 = vadd.f32 %v469_v33, %v450_v30  ;;  %870 = vmatpush.msra.mxu0 %v809_v40  ;;  %930 = vmatpush.msrb.mxu3 %v897_v24  ;;  %v1003_v40 = vld [vmem:[%s4067_s11 + $0x10] sm:$0xff] }
  0xd2   :  { %v1349_v24 = vld [vmem:[%s4071_s15 + $0x690] sm:$0xff] }
  0xd3   :  { %v489_v35 = vpop.f32.mrf.mxu1  ;;  %v509_v36 = vpop.f32.mrf.mxu2  ;;  %871 = vmatpush.msra.mxu0 %v808_v41  ;;  %931 = vmatpush.msrb.mxu3 %v896_v25  ;;  %v1879_v41 = vld [vmem:[%s4064_s8] ss:$0 sm:$0xff]  ;;  %v1342_v25 = vld [vmem:[%s4071_s15 + $0x658] sm:$0xff] }
  0xd4   :  { %v490_v38 = vadd.f32 %v489_v35, %v470_v63  ;;  %v936_v35 = vld [vmem:[%s4063_s7] sm:$0xff] }
  0xd5   :  { %962 = vmatpush.msrb.mxu1 %v936_v35  ;;  %1410 = vmatpush.msra.mxu3 %v1244_v26  ;;  %v1231_v35 = vld [vmem:[%s4071_s15 + $0x2e0] sm:$0xff] }
  0xd6   :  { %v510_v57 = vadd.f32 %v509_v36, %v490_v38  ;;  %v1878_v36 = vld [vmem:[%s4062_s6] ss:$0 sm:$0xff]  ;;  %s1844_s6 = sshll.u32 %s4073_s17, 4  ;;  %s1845_s6 = int_to_ptr.hbm [resolvable:$true] %s1844_s6 }
  0xd7   :  { %v1379_v26 = vld [vmem:[%s4071_s15 + $0x780] sm:$0xff] }
  0xd8   :  { %852 = vmatmul.f32.vlgmr.msrb.gmra.mxu2 %v510_v57  ;;  %v1004_v57 = vld [vmem:[%s4067_s11 + $0x18] sm:$0xff] }
  0xd9   :  { %1863 = vmatpush.msk.msrb.mxu2 %vm977_vm3, %v969_v39  ;;  %1024 = vmatpush.msrb.mxu0 %v1004_v57  ;;  %v1224_v39 = vld [vmem:[%s4071_s15 + $0x2a8] sm:$0xff] }
  0xda   :  { %v1216_v57 = vld [vmem:[%s4071_s15 + $0x268] sm:$0xff] }
  0xdb   :  { %1025 = vmatpush.msrb.mxu0 %v1003_v40  ;;  %v1314_v40 = vld [vmem:[%s4071_s15 + $0x578] sm:$0xff] }
  0xe9   :  { %v529_v42 = vpop.f32.mrf.mxu3 }
  0xea   :  { %v530_v43 = vadd.f32 %v529_v42, %v363_v58 }
  0xec   :  { %v549_v44 = vpop.f32.mrf.mxu2 }
  0xed   :  { %v550_v45 = vadd.f32 %v549_v44, %v530_v43  ;;  %v1002_v43 = vld [vmem:[%s4067_s11 + $0x8] sm:$0xff]  ;;  %v1001_v44 = vld [vmem:[%s4067_s11] sm:$0xff] }
  0xee   :  { %1026 = vmatpush.msrb.mxu0 %v1002_v43  ;;  %v1210_v43 = vld [vmem:[%s4071_s15 + $0x238] sm:$0xff] }
  0xef   :  { %v569_v46 = vpop.f32.mrf.mxu0 }
  0xf0   :  { %v570_v47 = vadd.f32 %v569_v46, %v550_v45  ;;  %1027 = vmatpush.msrb.mxu0 %v1001_v44  ;;  %v1065_v45 = vld [vmem:[%s4069_s13 + $0x108] sm:$0xff]  ;;  %v1066_v46 = vld [vmem:[%s4069_s13 + $0x110] sm:$0xff]  ;;  %v1202_v44 = vld [vmem:[%s4071_s15 + $0x1f8] sm:$0xff] }
  0xf1   :  { %v589_v48 = vpop.f32.mrf.mxu1  ;;  %1083 = vmatpush.msra.mxu1 %v1065_v45  ;;  %v1300_v45 = vld [vmem:[%s4071_s15 + $0x508] sm:$0xff] }
  0xf2   :  { %v590_v4 = vadd.f32 %v589_v48, %v570_v47  ;;  %v1067_v47 = vld [vmem:[%s4069_s13 + $0x118] sm:$0xff]  ;;  %v1062_v48 = vld [vmem:[%s4069_s13 + $0xf0] sm:$0xff] }
  0xf3   :  { %1084 = vmatpush.msra.mxu1 %v1062_v48  ;;  %v1293_v48 = vld [vmem:[%s4071_s15 + $0x4d0] sm:$0xff] }
  0xf4   :  { %v609_v49 = vpop.f32.mrf.mxu3 }
  0xf5   :  { %v610_v50 = vadd.f32 %v609_v49, %v590_v4  ;;  %v1063_v4 = vld [vmem:[%s4069_s13 + $0xf8] sm:$0xff]  ;;  %v1064_v49 = vld [vmem:[%s4069_s13 + $0x100] sm:$0xff] }
  0xf6   :  { %v629_v51 = vpop.f32.mrf.mxu2 }
  0xf7   :  { %v630_v52 = vadd.f32 %v629_v51, %v610_v50  ;;  %v649_v53 = vpop.f32.mrf.mxu0  ;;  %v1059_v50 = vld [vmem:[%s4069_s13 + $0xd8] sm:$0xff]  ;;  %v1060_v51 = vld [vmem:[%s4069_s13 + $0xe0] sm:$0xff] }
  0xf8   :  { %1085 = vmatpush.msra.mxu1 %v1059_v50  ;;  %v1286_v50 = vld [vmem:[%s4071_s15 + $0x498] sm:$0xff] }
  0xf9   :  { %v650_v54 = vadd.f32 %v649_v53, %v630_v52  ;;  %v1061_v52 = vld [vmem:[%s4069_s13 + $0xe8] sm:$0xff]  ;;  %v1056_v53 = vld [vmem:[%s4069_s13 + $0xc0] sm:$0xff] }
  0xfa   :  { %1086 = vmatpush.msra.mxu1 %v1056_v53  ;;  %v1279_v53 = vld [vmem:[%s4071_s15 + $0x460] sm:$0xff] }
  0xfb   :  { %872 = vmatmul.f32.vlgmr.msra.gmra.mxu0 %v650_v54  ;;  %v1057_v54 = vld [vmem:[%s4069_s13 + $0xc8] sm:$0xff] }
  0xfc   :  { %1123 = vmatpush.msra.mxu0 %v1067_v47  ;;  %1087 = vmatpush.msra.mxu1 %v1053_v56  ;;  %v1195_v47 = vld [vmem:[%s4071_s15 + $0x1c0] sm:$0xff]  ;;  %v1272_v56 = vld [vmem:[%s4071_s15 + $0x428] sm:$0xff] }
  0xfe   :  { %1124 = vmatpush.msra.mxu0 %v1064_v49  ;;  %v1188_v49 = vld [vmem:[%s4071_s15 + $0x188] sm:$0xff] }
 0x100   :  { %1125 = vmatpush.msra.mxu0 %v1061_v52  ;;  %v1181_v52 = vld [vmem:[%s4071_s15 + $0x150] sm:$0xff] }
 0x102   :  { %1126 = vmatpush.msra.mxu0 %v1058_v55  ;;  %v1174_v55 = vld [vmem:[%s4071_s15 + $0x118] sm:$0xff] }
 0x104   :  { %1127 = vmatpush.msra.mxu0 %v1055_v60  ;;  %v1167_v60 = vld [vmem:[%s4071_s15 + $0xe0] sm:$0xff] }
 0x115   :  { %v669_v9 = vpop.f32.mrf.mxu1 }
 0x116   :  { %v670_v62 = vadd.f32 %v669_v9, %v364_v61  ;;  %v689_v0 = vpop.f32.mrf.mxu3  ;;  %v1050_v61 = vld [vmem:[%s4069_s13 + $0x90] sm:$0xff]  ;;  %v1051_v9 = vld [vmem:[%s4069_s13 + $0x98] sm:$0xff] }
 0x117   :  { %1088 = vmatpush.msra.mxu1 %v1050_v61  ;;  %v1265_v61 = vld [vmem:[%s4071_s15 + $0x3f0] sm:$0xff] }
 0x118   :  { %v690_v1 = vadd.f32 %v689_v0, %v670_v62  ;;  %v1052_v62 = vld [vmem:[%s4069_s13 + $0xa0] sm:$0xff]  ;;  %v1047_v0 = vld [vmem:[%s4069_s13 + $0x78] sm:$0xff] }
 0x119   :  { %v709_v2 = vpop.f32.mrf.mxu0  ;;  %1128 = vmatpush.msra.mxu0 %v1052_v62  ;;  %1089 = vmatpush.msra.mxu1 %v1047_v0  ;;  %v1881_v62 = vld [vmem:[%s4068_s12] ss:$0 sm:$0xff]  ;;  %v1160_v0 = vld [vmem:[%s4071_s15 + $0xa8] sm:$0xff] }
 0x11a   :  { %v710_v3 = vadd.f32 %v709_v2, %v690_v1  ;;  %v729_v5 = vpop.f32.mrf.mxu2  ;;  %v1048_v1 = vld [vmem:[%s4069_s13 + $0x80] sm:$0xff]  ;;  %v1049_v2 = vld [vmem:[%s4069_s13 + $0x88] sm:$0xff] }
 0x11b   :  { %1129 = vmatpush.msra.mxu0 %v1049_v2  ;;  %v1161_v2 = vld [vmem:[%s4071_s15 + $0xb0] sm:$0xff] }
 0x11c   :  { %v730_v6 = vadd.f32 %v729_v5, %v710_v3  ;;  %v1044_v3 = vld [vmem:[%s4069_s13 + $0x60] sm:$0xff]  ;;  %v1045_v5 = vld [vmem:[%s4069_s13 + $0x68] sm:$0xff] }
 0x11d   :  { %1090 = vmatpush.msra.mxu1 %v1044_v3  ;;  %v1153_v3 = vld [vmem:[%s4071_s15 + $0x70] sm:$0xff] }
 0x121   :  { %v789_v10 = vpop.f32.mrf.mxu0 }
 0x131   :  { %v749_v7 = vpop.f32.mrf.mxu1 }
 0x132   :  { %v750_v21 = vadd.f32 %v749_v7, %v730_v6  ;;  %v769_v8 = vpop.f32.mrf.mxu3  ;;  %v1046_v6 = vld [vmem:[%s4069_s13 + $0x70] sm:$0xff]  ;;  %v1041_v7 = vld [vmem:[%s4069_s13 + $0x48] sm:$0xff] }
 0x133   :  { %1130 = vmatpush.msra.mxu0 %v1046_v6  ;;  %1091 = vmatpush.msra.mxu1 %v1041_v7  ;;  %v1357_v7 = vld [vmem:[%s4071_s15 + $0x6d0] sm:$0xff] }
 0x134   :  { %v770_v16 = vadd.f32 %v769_v8, %v750_v21  ;;  %v1042_v21 = vld [vmem:[%s4069_s13 + $0x50] sm:$0xff]  ;;  %v1043_v8 = vld [vmem:[%s4069_s13 + $0x58] sm:$0xff] }
 0x135   :  { %1131 = vmatpush.msra.mxu0 %v1043_v8  ;;  %v1154_v8 = vld [vmem:[%s4071_s15 + $0x78] sm:$0xff] }
 0x136   :  { %v790_v11 = vadd.f32 %v789_v10, %v770_v16  ;;  %v1038_v10 = vld [vmem:[%s4069_s13 + $0x30] sm:$0xff]  ;;  %v1039_v16 = vld [vmem:[%s4069_s13 + $0x38] sm:$0xff] }
 0x137   :  { %1092 = vmatpush.msra.mxu1 %v1038_v10  ;;  %v1350_v10 = vld [vmem:[%s4071_s15 + $0x698] sm:$0xff] }
 0x138   :  { %1860 = vmatmul.msk.f32.vlgmr.msra.gmra.mxu2 %vm832_vm1, %v790_v11  ;;  %v1040_v11 = vld [vmem:[%s4069_s13 + $0x40] sm:$0xff] }
 0x139   :  { %1103 = vmatpush.msra.mxu2 %v1066_v46  ;;  %1132 = vmatpush.msra.mxu0 %v1040_v11  ;;  %v1203_v46 = vld [vmem:[%s4071_s15 + $0x200] sm:$0xff]  ;;  %v1146_v11 = vld [vmem:[%s4071_s15 + $0x38] sm:$0xff] }
 0x13a   :  { %1093 = vmatpush.msra.mxu1 %v1035_v15  ;;  %v1139_v15 = vld [vmem:[%s4071_s15] sm:$0xff] }
 0x13b   :  { %1104 = vmatpush.msra.mxu2 %v1063_v4  ;;  %1133 = vmatpush.msra.mxu0 %v1037_v18  ;;  %v1196_v4 = vld [vmem:[%s4071_s15 + $0x1c8] sm:$0xff] }
 0x13c   :  { %1094 = vmatpush.msra.mxu1 %v1032_v19  ;;  %v1336_v18 = vld [vmem:[%s4071_s15 + $0x628] sm:$0xff] }
 0x13d   :  { %1105 = vmatpush.msra.mxu2 %v1060_v51  ;;  %1134 = vmatpush.msra.mxu0 %v1034_v22  ;;  %v1189_v51 = vld [vmem:[%s4071_s15 + $0x190] sm:$0xff]  ;;  %v1344_v19 = vld [vmem:[%s4071_s15 + $0x668] sm:$0xff]  ;;  %v1386_v22 = vld [vmem:[%s4071_s15 + $0x7b8] sm:$0xff] }
 0x13f   :  { %1106 = vmatpush.msra.mxu2 %v1057_v54  ;;  %v1182_v54 = vld [vmem:[%s4071_s15 + $0x158] sm:$0xff] }
 0x141   :  { %1107 = vmatpush.msra.mxu2 %v1054_v59  ;;  %v1175_v59 = vld [vmem:[%s4071_s15 + $0x120] sm:$0xff] }
 0x143   :  { %1108 = vmatpush.msra.mxu2 %v1051_v9  ;;  %v1168_v9 = vld [vmem:[%s4071_s15 + $0xe8] sm:$0xff] }
 0x145   :  { %1109 = vmatpush.msra.mxu2 %v1048_v1  ;;  %v1258_v1 = vld [vmem:[%s4071_s15 + $0x3b8] sm:$0xff] }
 0x147   :  { %1110 = vmatpush.msra.mxu2 %v1045_v5 }
 0x149   :  { %1111 = vmatpush.msra.mxu2 %v1042_v21  ;;  %v1251_v21 = vld [vmem:[%s4071_s15 + $0x380] sm:$0xff] }
 0x14b   :  { %1112 = vmatpush.msra.mxu2 %v1039_v16  ;;  %v1358_v16 = vld [vmem:[%s4071_s15 + $0x6d8] sm:$0xff] }
 0x14d   :  { %1113 = vmatpush.msra.mxu2 %v1036_v17  ;;  %v1140_v17 = vld [vmem:[%s4071_s15 + $0x8] sm:$0xff] }
 0x14f   :  { %1114 = vmatpush.msra.mxu2 %v1033_v20  ;;  %v1385_v20 = vld [vmem:[%s4071_s15 + $0x7b0] sm:$0xff] }
 0x15b   :  { %v853_v28 = vpop.f32.mrf.mxu2 }
 0x15c   :  { %v854_v31 = vadd.f32 %v1877_v29, %v853_v28  ;;  %v1335_v28 = vld [vmem:[%s4071_s15 + $0x620] sm:$0xff]  ;;  %v1245_v29 = vld [vmem:[%s4071_s15 + $0x350] sm:$0xff] }
 0x178   :  { %v873_v30 = vpop.f32.mrf.mxu0 }
 0x179   :  { %v874_v32 = vadd.f32 %v873_v30, %v854_v31  ;;  %v1237_v30 = vld [vmem:[%s4071_s15 + $0x310] sm:$0xff] }
 0x17a   :  { %v1377_v31 = vld [vmem:[%s4071_s15 + $0x770] sm:$0xff]  ;;  %1411 = vmatpush.msra.mxu3 %v1237_v30  ;;  %v1323_v30 = vld [vmem:[%s4071_s15 + $0x5c0] sm:$0xff] }
 0x1bb   :  { %v893_v33 = vpop.f32.mrf.mxu2 }
 0x1bc   :  { %v894_v63 = vadd.f32 %v893_v33, %v874_v32  ;;  %v1238_v32 = vld [vmem:[%s4071_s15 + $0x318] sm:$0xff] }
 0x1bd   :  { %v1230_v33 = vld [vmem:[%s4071_s15 + $0x2d8] sm:$0xff] }
 0x1be   :  { %1861 = vmatmul.msk.f32.vlgmr.msrb.gmra.mxu3 %vm912_vm2, %v894_v63  ;;  %v1328_v63 = vld [vmem:[%s4071_s15 + $0x5e8] sm:$0xff] }
 0x1bf   :  { %1412 = vmatpush.msra.mxu3 %v1230_v33  ;;  %v1301_v33 = vld [vmem:[%s4071_s15 + $0x510] sm:$0xff] }
 0x241   :  { %v933_v37 = vpop.f32.mrf.mxu3 }
 0x242   :  { %v934_v38 = vadd.f32 %v1878_v36, %v933_v37  ;;  %v1223_v36 = vld [vmem:[%s4071_s15 + $0x2a0] sm:$0xff] }
 0x243   :  { %v1363_v37 = vld [vmem:[%s4071_s15 + $0x700] sm:$0xff]  ;;  %1413 = vmatpush.msra.mxu3 %v1223_v36 }
 0x244   :  { %1862 = vmatmul.msk.f32.vlgmr.msrb.gmra.mxu1 %vm832_vm1, %v934_v38  ;;  %v1321_v38 = vld [vmem:[%s4071_s15 + $0x5b0] sm:$0xff]  ;;  %v1287_v36 = vld [vmem:[%s4071_s15 + $0x4a0] sm:$0xff] }
 0x245   :  { %1430 = vmatpush.msrb.mxu1 %v1356_v23  ;;  %1414 = vmatpush.msra.mxu3 %v1216_v57  ;;  %v1329_v23 = vld [vmem:[%s4071_s15 + $0x5f0] sm:$0xff] }
 0x246   :  { %v1273_v57 = vld [vmem:[%s4071_s15 + $0x430] sm:$0xff] }
 0x247   :  { %1431 = vmatpush.msrb.mxu1 %v1349_v24  ;;  %v1337_v24 = vld [vmem:[%s4071_s15 + $0x630] sm:$0xff] }
 0x249   :  { %1432 = vmatpush.msrb.mxu1 %v1342_v25  ;;  %v1378_v25 = vld [vmem:[%s4071_s15 + $0x778] sm:$0xff] }
 0x24b   :  { %1433 = vmatpush.msrb.mxu1 %v1335_v28  ;;  %v1330_v28 = vld [vmem:[%s4071_s15 + $0x5f8] sm:$0xff] }
 0x24d   :  { %1434 = vmatpush.msrb.mxu1 %v1328_v63  ;;  %v1309_v63 = vld [vmem:[%s4071_s15 + $0x550] sm:$0xff] }
 0x24f   :  { %1435 = vmatpush.msrb.mxu1 %v1321_v38  ;;  %v1280_v38 = vld [vmem:[%s4071_s15 + $0x468] sm:$0xff] }
 0x251   :  { %1436 = vmatpush.msrb.mxu1 %v1314_v40  ;;  %v1266_v40 = vld [vmem:[%s4071_s15 + $0x3f8] sm:$0xff] }
 0x2c1   :  { %v964_v58 = vpop.f32.mrf.mxu1 }
 0x2c2   :  { %v965_v42 = vadd.f32 %v1879_v41, %v964_v58  ;;  %v1217_v41 = vld [vmem:[%s4071_s15 + $0x270] sm:$0xff] }
 0x2c3   :  { %v1209_v58 = vld [vmem:[%s4071_s15 + $0x230] sm:$0xff] }
 0x2c4   :  { %968 = vst.msk [vmem:[%s4074_s18] sm:$0xff] %vm967_vm4, %v965_v42  ;;  %1864 = vmatmul.msk.f32.vlgmr.msrb.gmra.mxu2 %vm967_vm4, %v965_v42  ;;  %v1307_v42 = vld [vmem:[%s4071_s15 + $0x540] sm:$0xff]  ;;  %1415 = vmatpush.msra.mxu3 %v1209_v58 }
 0x2c5   :  { %1462 = vmatpush.msrb.mxu2 %v1384_v27  ;;  %1437 = vmatpush.msrb.mxu1 %v1307_v42  ;;  %v1322_v27 = vld [vmem:[%s4071_s15 + $0x5b8] sm:$0xff]  ;;  %v1371_v58 = vld [vmem:[%s4071_s15 + $0x740] sm:$0xff]  ;;  %v1281_v42 = vld [vmem:[%s4071_s15 + $0x470] sm:$0xff] }
 0x2c6   :  { %1416 = vmatpush.msra.mxu3 %v1202_v44  ;;  %v1252_v44 = vld [vmem:[%s4071_s15 + $0x388] sm:$0xff] }
 0x2c7   :  { %1463 = vmatpush.msrb.mxu2 %v1377_v31  ;;  %1438 = vmatpush.msrb.mxu1 %v1300_v45  ;;  %v1308_v31 = vld [vmem:[%s4071_s15 + $0x548] sm:$0xff] }
 0x2c8   :  { %1417 = vmatpush.msra.mxu3 %v1195_v47  ;;  %v1364_v45 = vld [vmem:[%s4071_s15 + $0x708] sm:$0xff]  ;;  %v1365_v47 = vld [vmem:[%s4071_s15 + $0x710] sm:$0xff] }
 0x2c9   :  { %1464 = vmatpush.msrb.mxu2 %v1370_v34  ;;  %1439 = vmatpush.msrb.mxu1 %v1293_v48  ;;  %v1294_v34 = vld [vmem:[%s4071_s15 + $0x4d8] sm:$0xff]  ;;  %v1267_v48 = vld [vmem:[%s4071_s15 + $0x400] sm:$0xff] }
 0x2ca   :  { %1418 = vmatpush.msra.mxu3 %v1188_v49  ;;  %v1253_v49 = vld [vmem:[%s4071_s15 + $0x390] sm:$0xff] }
 0x2cb   :  { %1465 = vmatpush.msrb.mxu2 %v1363_v37  ;;  %1440 = vmatpush.msrb.mxu1 %v1286_v50  ;;  %v1295_v37 = vld [vmem:[%s4071_s15 + $0x4e0] sm:$0xff] }
 0x2cc   :  { %1419 = vmatpush.msra.mxu3 %v1181_v52  ;;  %v1068_v50 = vld [vmem:[%s4070_s14] sm:$0x7] }
 0x2cd   :  { %1441 = vmatpush.msrb.mxu1 %v1279_v53  ;;  %v1072_v52 = vperm.slane %v1068_v50, 2 }
 0x2ce   :  { %1420 = vmatpush.msra.mxu3 %v1174_v55 }
 0x2cf   :  { %1442 = vmatpush.msrb.mxu1 %v1272_v56  ;;  %v1246_v56 = vld [vmem:[%s4071_s15 + $0x358] sm:$0xff] }
 0x2d0   :  { %1421 = vmatpush.msra.mxu3 %v1167_v60  ;;  %v1247_v60 = vld [vmem:[%s4071_s15 + $0x360] sm:$0xff] }
 0x2d1   :  { %1443 = vmatpush.msrb.mxu1 %v1265_v61  ;;  %v1359_v61 = vld [vmem:[%s4071_s15 + $0x6e0] sm:$0xff] }
 0x2d2   :  { %1422 = vmatpush.msra.mxu3 %v1160_v0  ;;  %v1240_v0 = vld [vmem:[%s4071_s15 + $0x328] sm:$0xff] }
 0x2d3   :  { %1444 = vmatpush.msrb.mxu1 %v1258_v1  ;;  %v1352_v1 = vld [vmem:[%s4071_s15 + $0x6a8] sm:$0xff] }
 0x2d4   :  { %1423 = vmatpush.msra.mxu3 %v1153_v3 }
 0x2d5   :  { %1445 = vmatpush.msrb.mxu1 %v1251_v21  ;;  %v1225_v21 = vld [vmem:[%s4071_s15 + $0x2b0] sm:$0xff] }
 0x2d6   :  { %1424 = vmatpush.msra.mxu3 %v1146_v11  ;;  %v1218_v11 = vld [vmem:[%s4071_s15 + $0x278] sm:$0xff] }
 0x2d8   :  { %1425 = vmatpush.msra.mxu3 %v1139_v15  ;;  %v1211_v15 = vld [vmem:[%s4071_s15 + $0x240] sm:$0xff] }
 0x2da   :  { %1522 = vmatpush.msrb.mxu3 %v1385_v20  ;;  %v1204_v20 = vld [vmem:[%s4071_s15 + $0x208] sm:$0xff] }
 0x2dc   :  { %1523 = vmatpush.msrb.mxu3 %v1378_v25  ;;  %v1197_v25 = vld [vmem:[%s4071_s15 + $0x1d0] sm:$0xff] }
 0x2de   :  { %1524 = vmatpush.msrb.mxu3 %v1371_v58  ;;  %v1192_v58 = vld [vmem:[%s4071_s15 + $0x1a8] sm:$0xff] }
 0x2e0   :  { %1525 = vmatpush.msrb.mxu3 %v1364_v45  ;;  %v1185_v45 = vld [vmem:[%s4071_s15 + $0x170] sm:$0xff] }
 0x347   :  { %v998_v13 = vpop.f32.mrf.mxu2 }
 0x348   :  { %v999_v14 = vadd.f32 %v1880_v12, %v998_v13  ;;  %v1147_v12 = vld [vmem:[%s4071_s15 + $0x40] sm:$0xff] }
 0x349   :  { %v1343_v13 = vld [vmem:[%s4071_s15 + $0x660] sm:$0xff] }
 0x34a   :  { %1865 = vmatmul.msk.f32.vlgmr.msrb.gmra.mxu0 %vm832_vm1, %v999_v14  ;;  %v1351_v14 = vld [vmem:[%s4071_s15 + $0x6a0] sm:$0xff] }
 0x34b   :  { %1470 = vmatpush.msrb.mxu0 %v1245_v29  ;;  %v1315_v29 = vld [vmem:[%s4071_s15 + $0x580] sm:$0xff] }
 0x34d   :  { %1471 = vmatpush.msrb.mxu0 %v1238_v32  ;;  %v1316_v32 = vld [vmem:[%s4071_s15 + $0x588] sm:$0xff] }
 0x34f   :  { %1472 = vmatpush.msrb.mxu0 %v1231_v35  ;;  %v1302_v35 = vld [vmem:[%s4071_s15 + $0x518] sm:$0xff] }
 0x351   :  { %1473 = vmatpush.msrb.mxu0 %v1224_v39  ;;  %v1288_v39 = vld [vmem:[%s4071_s15 + $0x4a8] sm:$0xff] }
 0x353   :  { %1474 = vmatpush.msrb.mxu0 %v1217_v41  ;;  %v1259_v41 = vld [vmem:[%s4071_s15 + $0x3c0] sm:$0xff] }
 0x355   :  { %1475 = vmatpush.msrb.mxu0 %v1210_v43  ;;  %v1372_v43 = vld [vmem:[%s4071_s15 + $0x748] sm:$0xff] }
 0x357   :  { %1476 = vmatpush.msrb.mxu0 %v1203_v46  ;;  %v1274_v46 = vld [vmem:[%s4071_s15 + $0x438] sm:$0xff] }
 0x359   :  { %1477 = vmatpush.msrb.mxu0 %v1196_v4  ;;  %v1260_v4 = vld [vmem:[%s4071_s15 + $0x3c8] sm:$0xff] }
 0x35b   :  { %1478 = vmatpush.msrb.mxu0 %v1189_v51  ;;  %v1070_v51 = vperm.slane %v1068_v50, 0 }
 0x35d   :  { %1479 = vmatpush.msrb.mxu0 %v1182_v54 }
 0x35f   :  { %1480 = vmatpush.msrb.mxu0 %v1175_v59 }
 0x361   :  { %1481 = vmatpush.msrb.mxu0 %v1168_v9  ;;  %v1239_v9 = vld [vmem:[%s4071_s15 + $0x320] sm:$0xff] }
 0x363   :  { %1482 = vmatpush.msrb.mxu0 %v1161_v2  ;;  %v1232_v2 = vld [vmem:[%s4071_s15 + $0x2e8] sm:$0xff] }
 0x365   :  { %1483 = vmatpush.msrb.mxu0 %v1154_v8  ;;  %v1226_v8 = vld [vmem:[%s4071_s15 + $0x2b8] sm:$0xff] }
 0x367   :  { %1484 = vmatpush.msrb.mxu0 %v1147_v12  ;;  %v1219_v12 = vld [vmem:[%s4071_s15 + $0x280] sm:$0xff] }
 0x369   :  { %1485 = vmatpush.msrb.mxu0 %v1140_v17  ;;  %v1212_v17 = vld [vmem:[%s4071_s15 + $0x248] sm:$0xff] }
 0x3c7   :  { %v1029_v5 = vpop.f32.mrf.mxu0 }
 0x3c8   :  { %v1030_v6 = vadd.f32 %v1881_v62, %v1029_v5  ;;  %v1071_v62 = vperm.slane %v1068_v50, 1  ;;  %v1233_v5 = vld [vmem:[%s4071_s15 + $0x2f0] sm:$0xff] }
 0x3c9   :  { %v1149_v50 = vld [vmem:[%s4071_s15 + $0x50] sm:$0xff] }
 0x3ca   :  { %1866 = vmatmul.msk.f32.vlgmr.msra.gmra.mxu1 %vm912_vm2, %v1030_v6  ;;  %1867 = vmatmul.msk.f32.vlgmr.msra.gmra.mxu2 %vm912_vm2, %v1030_v6 }
 0x3cb   :  { %1868 = vmatmul.msk.f32.vlgmr.msra.gmra.mxu0 %vm912_vm2, %v1030_v6  ;;  %1490 = vmatpush.msra.mxu2 %v1357_v7  ;;  %v1345_v6 = vld [vmem:[%s4071_s15 + $0x670] sm:$0xff] }
 0x3cc   :  { %1550 = vmatpush.msra.mxu1 %v1358_v16  ;;  %1582 = vmatpush.msra.mxu0 %v1386_v22  ;;  %v1248_v16 = vld [vmem:[%s4071_s15 + $0x368] sm:$0xff]  ;;  %v1205_v22 = vld [vmem:[%s4071_s15 + $0x210] sm:$0xff] }
 0x3cd   :  { %1491 = vmatpush.msra.mxu2 %v1350_v10  ;;  %v1338_v10 = vld [vmem:[%s4071_s15 + $0x638] sm:$0xff] }
 0x3ce   :  { %1551 = vmatpush.msra.mxu1 %v1351_v14  ;;  %1583 = vmatpush.msra.mxu0 %v1379_v26  ;;  %v1241_v14 = vld [vmem:[%s4071_s15 + $0x330] sm:$0xff]  ;;  %v1198_v26 = vld [vmem:[%s4071_s15 + $0x1d8] sm:$0xff] }
 0x3cf   :  { %1492 = vmatpush.msra.mxu2 %v1343_v13  ;;  %v1331_v13 = vld [vmem:[%s4071_s15 + $0x600] sm:$0xff] }
 0x3d0   :  { %1552 = vmatpush.msra.mxu1 %v1344_v19  ;;  %1584 = vmatpush.msra.mxu0 %v1372_v43  ;;  %v1234_v19 = vld [vmem:[%s4071_s15 + $0x2f8] sm:$0xff]  ;;  %v1163_v43 = vld [vmem:[%s4071_s15 + $0xc0] sm:$0xff] }
 0x3d1   :  { %1493 = vmatpush.msra.mxu2 %v1336_v18  ;;  %v1324_v18 = vld [vmem:[%s4071_s15 + $0x5c8] sm:$0xff] }
 0x3d2   :  { %1553 = vmatpush.msra.mxu1 %v1337_v24  ;;  %1585 = vmatpush.msra.mxu0 %v1365_v47  ;;  %v1227_v24 = vld [vmem:[%s4071_s15 + $0x2c0] sm:$0xff]  ;;  %v1156_v47 = vld [vmem:[%s4071_s15 + $0x88] sm:$0xff] }
 0x3d3   :  { %1494 = vmatpush.msra.mxu2 %v1329_v23  ;;  %v1317_v23 = vld [vmem:[%s4071_s15 + $0x590] sm:$0xff] }
 0x3d4   :  { %1554 = vmatpush.msra.mxu1 %v1330_v28  ;;  %v1220_v28 = vld [vmem:[%s4071_s15 + $0x288] sm:$0xff] }
 0x3d5   :  { %1495 = vmatpush.msra.mxu2 %v1322_v27  ;;  %v1310_v27 = vld [vmem:[%s4071_s15 + $0x558] sm:$0xff] }
 0x3d6   :  { %1555 = vmatpush.msra.mxu1 %v1323_v30  ;;  %v1191_v30 = vld [vmem:[%s4071_s15 + $0x1a0] sm:$0xff] }
 0x3d7   :  { %1496 = vmatpush.msra.mxu2 %v1315_v29  ;;  %v1190_v29 = vld [vmem:[%s4071_s15 + $0x198] sm:$0xff] }
 0x3d8   :  { %1556 = vmatpush.msra.mxu1 %v1316_v32  ;;  %v1213_v32 = vld [vmem:[%s4071_s15 + $0x250] sm:$0xff] }
 0x3d9   :  { %1497 = vmatpush.msra.mxu2 %v1308_v31  ;;  %v1303_v31 = vld [vmem:[%s4071_s15 + $0x520] sm:$0xff] }
 0x3da   :  { %1557 = vmatpush.msra.mxu1 %v1309_v63  ;;  %v1184_v63 = vld [vmem:[%s4071_s15 + $0x168] sm:$0xff] }
 0x3db   :  { %1498 = vmatpush.msra.mxu2 %v1301_v33  ;;  %v1183_v33 = vld [vmem:[%s4071_s15 + $0x160] sm:$0xff] }
 0x3dc   :  { %1558 = vmatpush.msra.mxu1 %v1302_v35  ;;  %v1206_v35 = vld [vmem:[%s4071_s15 + $0x218] sm:$0xff] }
 0x3dd   :  { %1499 = vmatpush.msra.mxu2 %v1294_v34  ;;  %v1296_v34 = vld [vmem:[%s4071_s15 + $0x4e8] sm:$0xff] }
 0x3de   :  { %1559 = vmatpush.msra.mxu1 %v1295_v37  ;;  %v1177_v37 = vld [vmem:[%s4071_s15 + $0x130] sm:$0xff] }
 0x3df   :  { %1500 = vmatpush.msra.mxu2 %v1287_v36  ;;  %v1176_v36 = vld [vmem:[%s4071_s15 + $0x128] sm:$0xff] }
 0x3e0   :  { %1560 = vmatpush.msra.mxu1 %v1288_v39  ;;  %v1199_v39 = vld [vmem:[%s4071_s15 + $0x1e0] sm:$0xff] }
 0x3e1   :  { %1501 = vmatpush.msra.mxu2 %v1280_v38  ;;  %v1289_v38 = vld [vmem:[%s4071_s15 + $0x4b0] sm:$0xff] }
 0x3e2   :  { %1561 = vmatpush.msra.mxu1 %v1281_v42  ;;  %v1162_v42 = vld [vmem:[%s4071_s15 + $0xb8] sm:$0xff] }
 0x3e3   :  { %1502 = vmatpush.msra.mxu2 %v1273_v57  ;;  %v1169_v57 = vld [vmem:[%s4071_s15 + $0xf0] sm:$0xff] }
 0x3e4   :  { %1562 = vmatpush.msra.mxu1 %v1274_v46  ;;  %v1155_v46 = vld [vmem:[%s4071_s15 + $0x80] sm:$0xff] }
 0x3e5   :  { %1503 = vmatpush.msra.mxu2 %v1266_v40  ;;  %v1170_v40 = vld [vmem:[%s4071_s15 + $0xf8] sm:$0xff] }
 0x3e6   :  { %1563 = vmatpush.msra.mxu1 %v1267_v48  ;;  %v1268_v48 = vld [vmem:[%s4071_s15 + $0x408] sm:$0xff] }
 0x3e7   :  { %1504 = vmatpush.msra.mxu2 %v1259_v41  ;;  %v1282_v41 = vld [vmem:[%s4071_s15 + $0x478] sm:$0xff] }
 0x3e8   :  { %1564 = vmatpush.msra.mxu1 %v1260_v4  ;;  %v1178_v4 = vld [vmem:[%s4071_s15 + $0x138] sm:$0xff] }
 0x3e9   :  { %1505 = vmatpush.msra.mxu2 %v1252_v44  ;;  %v1275_v44 = vld [vmem:[%s4071_s15 + $0x440] sm:$0xff] }
 0x3ea   :  { %1565 = vmatpush.msra.mxu1 %v1253_v49  ;;  %v1148_v49 = vld [vmem:[%s4071_s15 + $0x48] sm:$0xff] }
 0x447   :  { %v1096_v53 = vpop.f32.mrf.mxu1 }
 0x448   :  { %v3536_v54 = vadd.f32 %v1096_v53, %v1070_v51  ;;  %v1136_v55 = vpop.f32.mrf.mxu0  ;;  %v1261_v51 = vld [vmem:[%s4071_s15 + $0x3d0] sm:$0xff] }
 0x449   :  { %v3541_v59 = vadd.f32 %v1136_v55, %v1072_v52  ;;  %v1171_v52 = vld [vmem:[%s4071_s15 + $0x100] sm:$0xff]  ;;  %v1141_v53 = vld [vmem:[%s4071_s15 + $0x10] sm:$0xff]  ;;  %v1142_v55 = vld [vmem:[%s4071_s15 + $0x18] sm:$0xff] }
 0x44a   :  { %1426 = vmatmul.f32.vlgmr.msra.gmra.mxu3 %v3536_v54  ;;  %1486 = vmatmul.f32.vlgmr.msrb.gmra.mxu0 %v3536_v54 }
 0x44b   :  { %1869 = vmatmul.msk.f32.vlgmr.msrb.gmra.mxu2 %vm832_vm1, %v3541_v59  ;;  %1530 = vmatpush.msra.mxu3 %v1246_v56  ;;  %v1254_v56 = vld [vmem:[%s4071_s15 + $0x398] sm:$0xff] }
 0x44c   :  { %1590 = vmatpush.msrb.mxu2 %v1247_v60  ;;  %1610 = vmatpush.msrb.mxu0 %v1359_v61  ;;  %v1164_v60 = vld [vmem:[%s4071_s15 + $0xc8] sm:$0xff]  ;;  %v1387_v61 = vld [vmem:[%s4071_s15 + $0x7c0] sm:$0xff] }
 0x44d   :  { %1531 = vmatpush.msra.mxu3 %v1239_v9  ;;  %v1116_v3 = vpop.f32.mrf.mxu2  ;;  %v1388_v9 = vld [vmem:[%s4071_s15 + $0x7c8] sm:$0xff] }
 0x44e   :  { %1591 = vmatpush.msrb.mxu2 %v1240_v0  ;;  %1611 = vmatpush.msrb.mxu0 %v1352_v1  ;;  %v3571_v7 = vadd.f32 %v1116_v3, %v1071_v62  ;;  %v1249_v62 = vld [vmem:[%s4071_s15 + $0x370] sm:$0xff]  ;;  %v1380_v1 = vld [vmem:[%s4071_s15 + $0x788] sm:$0xff]  ;;  %v1242_v3 = vld [vmem:[%s4071_s15 + $0x338] sm:$0xff] }
 0x44f   :  { %1532 = vmatpush.msra.mxu3 %v1232_v2  ;;  %v1157_v0 = vld [vmem:[%s4071_s15 + $0x90] sm:$0xff] }
 0x450   :  { %1592 = vmatpush.msrb.mxu2 %v1233_v5  ;;  %1612 = vmatpush.msrb.mxu0 %v1345_v6  ;;  %v1381_v2 = vld [vmem:[%s4071_s15 + $0x790] sm:$0xff]  ;;  %v1150_v5 = vld [vmem:[%s4071_s15 + $0x58] sm:$0xff] }
 0x451   :  { %1446 = vmatmul.f32.vlgmr.msrb.gmra.mxu1 %v3571_v7  ;;  %1533 = vmatpush.msra.mxu3 %v1225_v21  ;;  %v1373_v6 = vld [vmem:[%s4071_s15 + $0x750] sm:$0xff]  ;;  %v1374_v21 = vld [vmem:[%s4071_s15 + $0x758] sm:$0xff] }
 0x452   :  { %1593 = vmatpush.msrb.mxu2 %v1226_v8  ;;  %1613 = vmatpush.msrb.mxu0 %v1338_v10  ;;  %v1235_v8 = vld [vmem:[%s4071_s15 + $0x300] sm:$0xff] }
 0x453   :  { %1650 = vmatpush.msrb.mxu1 %v1248_v16  ;;  %1506 = vmatmul.f32.vlgmr.msra.gmra.mxu2 %v3571_v7  ;;  %v1143_v10 = vld [vmem:[%s4071_s15 + $0x20] sm:$0xff]  ;;  %v1366_v16 = vld [vmem:[%s4071_s15 + $0x718] sm:$0xff] }
 0x454   :  { %1870 = vmatmul.msk.f32.vlgmr.msrb.gmra.mxu3 %vm832_vm1, %v3541_v59  ;;  %1871 = vmatmul.msk.f32.vlgmr.msra.gmra.mxu0 %vm832_vm1, %v3541_v59 }
 0x455   :  { %1534 = vmatpush.msra.mxu3 %v1218_v11  ;;  %1594 = vmatpush.msrb.mxu2 %v1219_v12  ;;  %v1367_v11 = vld [vmem:[%s4071_s15 + $0x720] sm:$0xff]  ;;  %v1228_v12 = vld [vmem:[%s4071_s15 + $0x2c8] sm:$0xff] }
 0x456   :  { %1614 = vmatpush.msrb.mxu0 %v1331_v13  ;;  %1651 = vmatpush.msrb.mxu1 %v1241_v14  ;;  %v1389_v13 = vld [vmem:[%s4071_s15 + $0x7d0] sm:$0xff]  ;;  %v1360_v14 = vld [vmem:[%s4071_s15 + $0x6e8] sm:$0xff] }
 0x457   :  { %1535 = vmatpush.msra.mxu3 %v1211_v15  ;;  %1595 = vmatpush.msrb.mxu2 %v1212_v17  ;;  %v1361_v15 = vld [vmem:[%s4071_s15 + $0x6f0] sm:$0xff] }
 0x458   :  { %1615 = vmatpush.msrb.mxu0 %v1324_v18  ;;  %1652 = vmatpush.msrb.mxu1 %v1234_v19  ;;  %v1221_v17 = vld [vmem:[%s4071_s15 + $0x290] sm:$0xff]  ;;  %v1382_v18 = vld [vmem:[%s4071_s15 + $0x798] sm:$0xff] }
 0x459   :  { %1536 = vmatpush.msra.mxu3 %v1204_v20  ;;  %1596 = vmatpush.msrb.mxu2 %v1205_v22  ;;  %v1353_v19 = vld [vmem:[%s4071_s15 + $0x6b0] sm:$0xff]  ;;  %v1354_v20 = vld [vmem:[%s4071_s15 + $0x6b8] sm:$0xff] }
 0x45a   :  { %1616 = vmatpush.msrb.mxu0 %v1317_v23  ;;  %1653 = vmatpush.msrb.mxu1 %v1227_v24  ;;  %v1214_v22 = vld [vmem:[%s4071_s15 + $0x258] sm:$0xff]  ;;  %v1375_v23 = vld [vmem:[%s4071_s15 + $0x760] sm:$0xff] }
 0x45b   :  { %1537 = vmatpush.msra.mxu3 %v1197_v25  ;;  %1566 = vmatmul.f32.vlgmr.msra.gmra.mxu1 %v3571_v7  ;;  %v1346_v24 = vld [vmem:[%s4071_s15 + $0x678] sm:$0xff]  ;;  %v1347_v25 = vld [vmem:[%s4071_s15 + $0x680] sm:$0xff] }
 0x45c   :  { %1597 = vmatpush.msrb.mxu2 %v1198_v26  ;;  %1617 = vmatpush.msrb.mxu0 %v1310_v27  ;;  %v1207_v26 = vld [vmem:[%s4071_s15 + $0x220] sm:$0xff]  ;;  %v1368_v27 = vld [vmem:[%s4071_s15 + $0x728] sm:$0xff] }
 0x45d   :  { %1654 = vmatpush.msrb.mxu1 %v1220_v28  ;;  %1538 = vmatpush.msra.mxu3 %v1190_v29  ;;  %v1339_v28 = vld [vmem:[%s4071_s15 + $0x640] sm:$0xff]  ;;  %v1340_v29 = vld [vmem:[%s4071_s15 + $0x648] sm:$0xff] }
 0x45e   :  { %1598 = vmatpush.msrb.mxu2 %v1191_v30  ;;  %1618 = vmatpush.msrb.mxu0 %v1303_v31  ;;  %v1362_v30 = vld [vmem:[%s4071_s15 + $0x6f8] sm:$0xff]  ;;  %v1200_v31 = vld [vmem:[%s4071_s15 + $0x1e8] sm:$0xff] }
 0x45f   :  { %1655 = vmatpush.msrb.mxu1 %v1213_v32  ;;  %1539 = vmatpush.msra.mxu3 %v1183_v33  ;;  %v1332_v32 = vld [vmem:[%s4071_s15 + $0x608] sm:$0xff]  ;;  %v1333_v33 = vld [vmem:[%s4071_s15 + $0x610] sm:$0xff] }
 0x460   :  { %1599 = vmatpush.msrb.mxu2 %v1184_v63  ;;  %1619 = vmatpush.msrb.mxu0 %v1296_v34  ;;  %v1355_v63 = vld [vmem:[%s4071_s15 + $0x6c0] sm:$0xff]  ;;  %v1193_v34 = vld [vmem:[%s4071_s15 + $0x1b0] sm:$0xff] }
 0x461   :  { %1656 = vmatpush.msrb.mxu1 %v1206_v35  ;;  %1540 = vmatpush.msra.mxu3 %v1176_v36  ;;  %v1325_v35 = vld [vmem:[%s4071_s15 + $0x5d0] sm:$0xff]  ;;  %v1326_v36 = vld [vmem:[%s4071_s15 + $0x5d8] sm:$0xff] }
 0x462   :  { %1600 = vmatpush.msrb.mxu2 %v1177_v37  ;;  %1620 = vmatpush.msrb.mxu0 %v1289_v38  ;;  %v1348_v37 = vld [vmem:[%s4071_s15 + $0x688] sm:$0xff]  ;;  %v1186_v38 = vld [vmem:[%s4071_s15 + $0x178] sm:$0xff] }
 0x463   :  { %1657 = vmatpush.msrb.mxu1 %v1199_v39  ;;  %1541 = vmatpush.msra.mxu3 %v1169_v57  ;;  %v1318_v39 = vld [vmem:[%s4071_s15 + $0x598] sm:$0xff]  ;;  %v1319_v57 = vld [vmem:[%s4071_s15 + $0x5a0] sm:$0xff] }
 0x464   :  { %1601 = vmatpush.msrb.mxu2 %v1170_v40  ;;  %1621 = vmatpush.msrb.mxu0 %v1282_v41  ;;  %v1341_v40 = vld [vmem:[%s4071_s15 + $0x650] sm:$0xff]  ;;  %v1179_v41 = vld [vmem:[%s4071_s15 + $0x140] sm:$0xff] }
 0x465   :  { %1658 = vmatpush.msrb.mxu1 %v1192_v58  ;;  %1542 = vmatpush.msra.mxu3 %v1162_v42  ;;  %v1311_v58 = vld [vmem:[%s4071_s15 + $0x560] sm:$0xff]  ;;  %v1312_v42 = vld [vmem:[%s4071_s15 + $0x568] sm:$0xff] }
 0x466   :  { %1602 = vmatpush.msrb.mxu2 %v1163_v43  ;;  %1622 = vmatpush.msrb.mxu0 %v1275_v44  ;;  %v1334_v43 = vld [vmem:[%s4071_s15 + $0x618] sm:$0xff]  ;;  %v1172_v44 = vld [vmem:[%s4071_s15 + $0x108] sm:$0xff] }
 0x467   :  { %1659 = vmatpush.msrb.mxu1 %v1185_v45  ;;  %1543 = vmatpush.msra.mxu3 %v1155_v46  ;;  %v1304_v45 = vld [vmem:[%s4071_s15 + $0x528] sm:$0xff]  ;;  %v1305_v46 = vld [vmem:[%s4071_s15 + $0x530] sm:$0xff] }
 0x468   :  { %1603 = vmatpush.msrb.mxu2 %v1156_v47  ;;  %1623 = vmatpush.msrb.mxu0 %v1268_v48  ;;  %v1327_v47 = vld [vmem:[%s4071_s15 + $0x5e0] sm:$0xff]  ;;  %v1165_v48 = vld [vmem:[%s4071_s15 + $0xd0] sm:$0xff] }
 0x469   :  { %1660 = vmatpush.msrb.mxu1 %v1178_v4  ;;  %1544 = vmatpush.msra.mxu3 %v1148_v49  ;;  %v1297_v4 = vld [vmem:[%s4071_s15 + $0x4f0] sm:$0xff]  ;;  %v1298_v49 = vld [vmem:[%s4071_s15 + $0x4f8] sm:$0xff] }
 0x46a   :  { %1604 = vmatpush.msrb.mxu2 %v1149_v50  ;;  %1624 = vmatpush.msrb.mxu0 %v1261_v51  ;;  %v1320_v50 = vld [vmem:[%s4071_s15 + $0x5a8] sm:$0xff]  ;;  %v1158_v51 = vld [vmem:[%s4071_s15 + $0x98] sm:$0xff] }
 0x46b   :  { %1661 = vmatpush.msrb.mxu1 %v1171_v52  ;;  %1545 = vmatpush.msra.mxu3 %v1141_v53  ;;  %v1290_v52 = vld [vmem:[%s4071_s15 + $0x4b8] sm:$0xff]  ;;  %v1291_v53 = vld [vmem:[%s4071_s15 + $0x4c0] sm:$0xff] }
 0x46c   :  { %1605 = vmatpush.msrb.mxu2 %v1142_v55  ;;  %1625 = vmatpush.msrb.mxu0 %v1254_v56  ;;  %v1313_v55 = vld [vmem:[%s4071_s15 + $0x570] sm:$0xff]  ;;  %v1151_v56 = vld [vmem:[%s4071_s15 + $0x60] sm:$0xff] }
 0x46d   :  { %1662 = vmatpush.msrb.mxu1 %v1164_v60  ;;  %1546 = vmatmul.f32.vlgmr.msra.gmra.mxu3 %v3536_v54  ;;  %v1283_v60 = vld [vmem:[%s4071_s15 + $0x480] sm:$0xff] }
 0x46e   :  { %1606 = vmatmul.f32.vlgmr.msrb.gmra.mxu2 %v3536_v54  ;;  %1626 = vmatmul.f32.vlgmr.msrb.gmra.mxu0 %v3571_v7 }
 0x46f   :  { %1642 = vmatpush.msrb.mxu3 %v1387_v61  ;;  %1702 = vmatpush.msra.mxu2 %v1388_v9  ;;  %v1284_v61 = vld [vmem:[%s4071_s15 + $0x488] sm:$0xff]  ;;  %v1306_v9 = vld [vmem:[%s4071_s15 + $0x538] sm:$0xff] }
 0x470   :  { %1710 = vmatpush.msra.mxu0 %v1249_v62  ;;  %1663 = vmatpush.msrb.mxu1 %v1157_v0  ;;  %v1144_v62 = vld [vmem:[%s4071_s15 + $0x28] sm:$0xff] }
 0x471   :  { %1643 = vmatpush.msrb.mxu3 %v1380_v1  ;;  %1703 = vmatpush.msra.mxu2 %v1381_v2  ;;  %v1276_v0 = vld [vmem:[%s4071_s15 + $0x448] sm:$0xff]  ;;  %v1277_v1 = vld [vmem:[%s4071_s15 + $0x450] sm:$0xff]  ;;  %v1299_v2 = vld [vmem:[%s4071_s15 + $0x500] sm:$0xff] }
 0x472   :  { %1711 = vmatpush.msra.mxu0 %v1242_v3  ;;  %1664 = vmatpush.msrb.mxu1 %v1150_v5  ;;  %v1390_v3 = vld [vmem:[%s4071_s15 + $0x7d8] sm:$0xff]  ;;  %v1269_v5 = vld [vmem:[%s4071_s15 + $0x410] sm:$0xff] }
 0x473   :  { %1644 = vmatpush.msrb.mxu3 %v1373_v6  ;;  %1704 = vmatpush.msra.mxu2 %v1374_v21  ;;  %v1270_v6 = vld [vmem:[%s4071_s15 + $0x418] sm:$0xff]  ;;  %v1292_v21 = vld [vmem:[%s4071_s15 + $0x4c8] sm:$0xff] }
 0x474   :  { %1712 = vmatpush.msra.mxu0 %v1235_v8  ;;  %1665 = vmatpush.msrb.mxu1 %v1143_v10  ;;  %v1383_v8 = vld [vmem:[%s4071_s15 + $0x7a0] sm:$0xff]  ;;  %v1262_v10 = vld [vmem:[%s4071_s15 + $0x3d8] sm:$0xff] }
 0x475   :  { %1645 = vmatpush.msrb.mxu3 %v1366_v16  ;;  %1666 = vmatmul.f32.vlgmr.msrb.gmra.mxu1 %v3536_v54  ;;  %v1263_v16 = vld [vmem:[%s4071_s15 + $0x3e0] sm:$0xff] }
 0x476   :  { %1705 = vmatpush.msra.mxu2 %v1367_v11  ;;  %1713 = vmatpush.msra.mxu0 %v1228_v12  ;;  %v1285_v11 = vld [vmem:[%s4071_s15 + $0x490] sm:$0xff]  ;;  %v1376_v12 = vld [vmem:[%s4071_s15 + $0x768] sm:$0xff] }
 0x477   :  { %1762 = vmatpush.msra.mxu1 %v1389_v13  ;;  %1670 = vmatpush.msra.mxu3 %v1360_v14  ;;  %v1255_v13 = vld [vmem:[%s4071_s15 + $0x3a0] sm:$0xff]  ;;  %v1256_v14 = vld [vmem:[%s4071_s15 + $0x3a8] sm:$0xff] }
 0x478   :  { %1730 = vmatpush.msrb.mxu2 %v1361_v15  ;;  %1872 = vmatmul.msk.f32.vlgmr.msrb.gmra.mxu3 %vm832_vm1, %v3541_v59  ;;  %v1278_v15 = vld [vmem:[%s4071_s15 + $0x458] sm:$0xff] }
 0x479   :  { %1873 = vmatmul.msk.f32.vlgmr.msra.gmra.mxu2 %vm832_vm1, %v3541_v59  ;;  %1714 = vmatpush.msra.mxu0 %v1221_v17  ;;  %v1250_v17 = vld [vmem:[%s4071_s15 + $0x378] sm:$0xff] }
 0x47a   :  { %1763 = vmatpush.msra.mxu1 %v1382_v18  ;;  %1671 = vmatpush.msra.mxu3 %v1353_v19  ;;  %v1369_v18 = vld [vmem:[%s4071_s15 + $0x730] sm:$0xff]  ;;  %v1271_v19 = vld [vmem:[%s4071_s15 + $0x420] sm:$0xff] }
 0x47b   :  { %1731 = vmatpush.msrb.mxu2 %v1354_v20  ;;  %1715 = vmatpush.msra.mxu0 %v1214_v22  ;;  %v1243_v20 = vld [vmem:[%s4071_s15 + $0x340] sm:$0xff]  ;;  %v1264_v22 = vld [vmem:[%s4071_s15 + $0x3e8] sm:$0xff] }
 0x47c   :  { %1764 = vmatpush.msra.mxu1 %v1375_v23  ;;  %1672 = vmatpush.msra.mxu3 %v1346_v24  ;;  %v1236_v23 = vld [vmem:[%s4071_s15 + $0x308] sm:$0xff]  ;;  %v1257_v24 = vld [vmem:[%s4071_s15 + $0x3b0] sm:$0xff] }
 0x47d   :  { %1732 = vmatpush.msrb.mxu2 %v1347_v25  ;;  %1716 = vmatpush.msra.mxu0 %v1207_v26  ;;  %v1229_v25 = vld [vmem:[%s4071_s15 + $0x2d0] sm:$0xff]  ;;  %v1215_v26 = vld [vmem:[%s4071_s15 + $0x260] sm:$0xff] }
 0x47e   :  { %1765 = vmatpush.msra.mxu1 %v1368_v27  ;;  %1673 = vmatpush.msra.mxu3 %v1339_v28  ;;  %v1208_v27 = vld [vmem:[%s4071_s15 + $0x228] sm:$0xff]  ;;  %v1201_v28 = vld [vmem:[%s4071_s15 + $0x1f0] sm:$0xff] }
 0x47f   :  { %1733 = vmatpush.msrb.mxu2 %v1340_v29  ;;  %1717 = vmatpush.msra.mxu0 %v1200_v31  ;;  %v1194_v29 = vld [vmem:[%s4071_s15 + $0x1b8] sm:$0xff]  ;;  %v1173_v31 = vld [vmem:[%s4071_s15 + $0x110] sm:$0xff] }
 0x480   :  { %1790 = vmatpush.msrb.mxu1 %v1362_v30  ;;  %1674 = vmatpush.msra.mxu3 %v1332_v32  ;;  %v1180_v30 = vld [vmem:[%s4071_s15 + $0x148] sm:$0xff]  ;;  %v1166_v32 = vld [vmem:[%s4071_s15 + $0xd8] sm:$0xff] }
 0x481   :  { %1874 = vmatmul.msk.f32.vlgmr.msra.gmra.mxu1 %vm832_vm1, %v3541_v59  ;;  %1734 = vmatpush.msrb.mxu2 %v1333_v33  ;;  %v1159_v33 = vld [vmem:[%s4071_s15 + $0xa0] sm:$0xff] }
 0x482   :  { %1791 = vmatpush.msrb.mxu1 %v1355_v63  ;;  %1718 = vmatpush.msra.mxu0 %v1193_v34  ;;  %v1152_v63 = vld [vmem:[%s4071_s15 + $0x68] sm:$0xff]  ;;  %v1145_v34 = vld [vmem:[%s4071_s15 + $0x30] sm:$0xff] }
 0x483   :  { %1675 = vmatpush.msra.mxu3 %v1325_v35  ;;  %1735 = vmatpush.msrb.mxu2 %v1326_v36  ;;  %v1391_v35 = vld [vmem:[%s4072_s16] sm:$0xff] }
 0x484   :  { %1792 = vmatpush.msrb.mxu1 %v1348_v37  ;;  %1719 = vmatpush.msra.mxu0 %v1186_v38  ;;  %v1393_v36 = vperm.slane %v1391_v35, 0 }
 0x485   :  { %1676 = vmatpush.msra.mxu3 %v1318_v39  ;;  %1736 = vmatpush.msrb.mxu2 %v1319_v57 }
 0x486   :  { %1793 = vmatpush.msrb.mxu1 %v1341_v40  ;;  %1720 = vmatpush.msra.mxu0 %v1179_v41  ;;  %v1394_v41 = vperm.slane %v1391_v35, 1 }
 0x487   :  { %1677 = vmatpush.msra.mxu3 %v1311_v58  ;;  %1737 = vmatpush.msrb.mxu2 %v1312_v42 }
 0x488   :  { %1794 = vmatpush.msrb.mxu1 %v1334_v43  ;;  %1721 = vmatpush.msra.mxu0 %v1172_v44 }
 0x489   :  { %1678 = vmatpush.msra.mxu3 %v1304_v45  ;;  %1738 = vmatpush.msrb.mxu2 %v1305_v46 }
 0x48a   :  { %1795 = vmatpush.msrb.mxu1 %v1327_v47  ;;  %1722 = vmatpush.msra.mxu0 %v1165_v48 }
 0x48b   :  { %1679 = vmatpush.msra.mxu3 %v1297_v4  ;;  %1739 = vmatpush.msrb.mxu2 %v1298_v49 }
 0x48c   :  { %1796 = vmatpush.msrb.mxu1 %v1320_v50  ;;  %1723 = vmatpush.msra.mxu0 %v1158_v51  ;;  %v1396_v51 = vperm.slane %v1391_v35, 3 }
 0x48d   :  { %1680 = vmatpush.msra.mxu3 %v1290_v52  ;;  %1740 = vmatpush.msrb.mxu2 %v1291_v53 }
 0x48e   :  { %1797 = vmatpush.msrb.mxu1 %v1313_v55  ;;  %1724 = vmatpush.msra.mxu0 %v1151_v56 }
 0x48f   :  { %1681 = vmatpush.msra.mxu3 %v1283_v60  ;;  %1741 = vmatpush.msrb.mxu2 %v1284_v61 }
 0x490   :  { %1798 = vmatpush.msrb.mxu1 %v1306_v9  ;;  %1725 = vmatpush.msra.mxu0 %v1144_v62 }
 0x491   :  { %1682 = vmatpush.msra.mxu3 %v1276_v0  ;;  %1726 = vmatmul.f32.vlgmr.msra.gmra.mxu0 %v3536_v54 }
 0x492   :  { %1742 = vmatpush.msrb.mxu2 %v1277_v1  ;;  %1799 = vmatpush.msrb.mxu1 %v1299_v2  ;;  %v1397_v2 = vperm.slane %v1391_v35, 4 }
 0x493   :  { %1822 = vmatpush.msrb.mxu0 %v1390_v3  ;;  %1683 = vmatpush.msra.mxu3 %v1269_v5  ;;  %v1398_v3 = vperm.slane %v1391_v35, 5 }
 0x494   :  { %1743 = vmatpush.msrb.mxu2 %v1270_v6  ;;  %1800 = vmatpush.msrb.mxu1 %v1292_v21 }
 0x495   :  { %1823 = vmatpush.msrb.mxu0 %v1383_v8  ;;  %1684 = vmatpush.msra.mxu3 %v1262_v10 }
 0x496   :  { %1744 = vmatpush.msrb.mxu2 %v1263_v16  ;;  %1801 = vmatpush.msrb.mxu1 %v1285_v11 }
 0x497   :  { %1824 = vmatpush.msrb.mxu0 %v1376_v12  ;;  %1685 = vmatpush.msra.mxu3 %v1255_v13 }
 0x498   :  { %1745 = vmatpush.msrb.mxu2 %v1256_v14  ;;  %1802 = vmatpush.msrb.mxu1 %v1278_v15  ;;  %v1399_v15 = vperm.slane %v1391_v35, 6 }
 0x499   :  { %1686 = vmatmul.f32.vlgmr.msra.gmra.mxu3 %v3571_v7  ;;  %1746 = vmatmul.f32.vlgmr.msrb.gmra.mxu2 %v3571_v7 }
 0x49a   :  { %1770 = vmatpush.msrb.mxu3 %v1250_v17  ;;  %1825 = vmatpush.msrb.mxu0 %v1369_v18 }
 0x49b   :  { %1803 = vmatpush.msrb.mxu1 %v1271_v19  ;;  %1875 = vmatmul.msk.f32.vlgmr.msrb.gmra.mxu0 %vm832_vm1, %v3541_v59  ;;  %v1222_v59 = vld [vmem:[%s4071_s15 + $0x298] sm:$0xff] }
 0x49c   :  { %1771 = vmatpush.msrb.mxu3 %v1243_v20 }
 0x49d   :  { %1804 = vmatpush.msrb.mxu1 %v1264_v22 }
 0x49e   :  { %1772 = vmatpush.msrb.mxu3 %v1236_v23 }
 0x49f   :  { %1805 = vmatpush.msrb.mxu1 %v1257_v24 }
 0x4a0   :  { %1773 = vmatpush.msrb.mxu3 %v1229_v25  ;;  %1806 = vmatmul.f32.vlgmr.msrb.gmra.mxu1 %v3571_v7  ;;  %v1187_v7 = vld [vmem:[%s4071_s15 + $0x180] sm:$0xff]  ;;  %s1908_s15 = smov [#allocation2]  }
 0x4a1   :  { %s1842_s16 = sshll.u32 %s1908_s15, 4  ;;  %s1843_s16 = int_to_ptr.vmem [resolvable:$true] %s1842_s16 }
 0x4a2   :  { %1774 = vmatpush.msrb.mxu3 %v1222_v59 }
 0x4a4   :  { %1775 = vmatpush.msrb.mxu3 %v1215_v26 }
 0x4a6   :  { %1776 = vmatpush.msrb.mxu3 %v1208_v27 }
 0x4a8   :  { %1777 = vmatpush.msrb.mxu3 %v1201_v28 }
 0x4aa   :  { %1778 = vmatpush.msrb.mxu3 %v1194_v29 }
 0x4ac   :  { %1779 = vmatpush.msrb.mxu3 %v1187_v7 }
 0x4ae   :  { %1780 = vmatpush.msrb.mxu3 %v1180_v30 }
 0x4b0   :  { %1781 = vmatpush.msrb.mxu3 %v1173_v31 }
 0x4b2   :  { %1782 = vmatpush.msrb.mxu3 %v1166_v32 }
 0x4b4   :  { %1783 = vmatpush.msrb.mxu3 %v1159_v33 }
 0x4b6   :  { %1784 = vmatpush.msrb.mxu3 %v1152_v63 }
 0x4b8   :  { %1785 = vmatpush.msrb.mxu3 %v1145_v34 }
 0x4b9   :  { %1786 = vmatmul.f32.vlgmr.msrb.gmra.mxu3 %v3536_v54  ;;  %v1395_v54 = vperm.slane %v1391_v35, 2 }
 0x4c7   :  { %v1487_v58 = vpop.f32.mrf.mxu0 }
 0x4c8   :  { %v1488_v43 = vadd.f32 %v1487_v58, %v1394_v41 }
 0x4cd   :  { %v1427_v37 = vpop.f32.mrf.mxu3 }
 0x4ce   :  { %v1428_v38 = vadd.f32 %v1427_v37, %v1393_v36  ;;  %v1467_v39 = vpop.f32.mrf.mxu2  ;;  %v1447_v57 = vpop.f32.mrf.mxu1 }
 0x4d0   :  { %v1448_v40 = vadd.f32 %v1447_v57, %v1428_v38 }
 0x4d1   :  { %v1587_v4 = vpop.f32.mrf.mxu0 }
 0x4d2   :  { %v1468_v42 = vadd.f32 %v1467_v39, %v1448_v40 }
 0x4d4   :  { %1830 = vst [vmem:[#allocation2] sm:$0xff] %v1468_v42 }
 0x4d6   :  { %v1507_v44 = vpop.f32.mrf.mxu2 }
 0x4d7   :  { %v1508_v45 = vadd.f32 %v1507_v44, %v1488_v43  ;;  %v1527_v46 = vpop.f32.mrf.mxu3 }
 0x4d8   :  { %v1567_v50 = vpop.f32.mrf.mxu1 }
 0x4d9   :  { %v1528_v47 = vadd.f32 %v1527_v46, %v1508_v45 }
 0x4db   :  { %1831 = vst [vmem:[#allocation2 + $0x8] sm:$0xff] %v1528_v47 }
 0x4eb   :  { %v1627_v60 = vpop.f32.mrf.mxu0 }
 0x4f0   :  { %v1547_v48 = vpop.f32.mrf.mxu3 }
 0x4f1   :  { %v1548_v49 = vadd.f32 %v1547_v48, %v1395_v54  ;;  %v1607_v53 = vpop.f32.mrf.mxu2 }
 0x4f2   :  { %v1608_v56 = vadd.f32 %v1607_v53, %v1396_v51  ;;  %v1667_v0 = vpop.f32.mrf.mxu1 }
 0x4f3   :  { %v1568_v52 = vadd.f32 %v1567_v50, %v1548_v49  ;;  %v1668_v6 = vadd.f32 %v1667_v0, %v1397_v2 }
 0x4f4   :  { %v1628_v61 = vadd.f32 %v1627_v60, %v1608_v56 }
 0x4f5   :  { %v1588_v55 = vadd.f32 %v1587_v4, %v1568_v52 }
 0x4f7   :  { %1832 = vst [vmem:[#allocation2 + $0x10] sm:$0xff] %v1588_v55 }
 0x4fb   :  { %v1647_v9 = vpop.f32.mrf.mxu3 }
 0x4fc   :  { %v1648_v62 = vadd.f32 %v1647_v9, %v1628_v61  ;;  %v1707_v1 = vpop.f32.mrf.mxu2 }
 0x4fe   :  { %1833 = vst [vmem:[#allocation2 + $0x18] sm:$0xff] %v1648_v62  ;;  %v1767_v12 = vpop.f32.mrf.mxu1 }
 0x50e   :  { %v1727_v5 = vpop.f32.mrf.mxu0 }
 0x50f   :  { %v1728_v21 = vadd.f32 %v1727_v5, %v1398_v3 }
 0x518   :  { %v1827_v22 = vpop.f32.mrf.mxu0 }
 0x51c   :  { %v1687_v8 = vpop.f32.mrf.mxu3  ;;  %v1747_v10 = vpop.f32.mrf.mxu2 }
 0x51d   :  { %v1688_v16 = vadd.f32 %v1687_v8, %v1668_v6  ;;  %v1748_v11 = vadd.f32 %v1747_v10, %v1728_v21  ;;  %v1807_v19 = vpop.f32.mrf.mxu1 }
 0x51f   :  { %v1708_v13 = vadd.f32 %v1707_v1, %v1688_v16  ;;  %v1768_v14 = vadd.f32 %v1767_v12, %v1748_v11 }
 0x521   :  { %1834 = vst [vmem:[#allocation2 + $0x20] sm:$0xff] %v1708_v13 }
 0x522   :  { %1835 = vst [vmem:[#allocation2 + $0x28] sm:$0xff] %v1768_v14 }
 0x53c   :  { %v1787_v17 = vpop.f32.mrf.mxu3 }
 0x53d   :  { %v1788_v18 = vadd.f32 %v1787_v17, %v1399_v15 }
 0x53f   :  { %v1808_v20 = vadd.f32 %v1807_v19, %v1788_v18 }
 0x541   :  { %v1828_v23 = vadd.f32 %v1827_v22, %v1808_v20 }
 0x543   :  { %1836 = vst [vmem:[#allocation2 + $0x30] sm:$0xff] %v1828_v23 }
 0x544   :  { %1847 = dma.vmem_to_hbm [thread:$0]  %s1843_s16, 896, %s1845_s6, [#allocation3]  }
 0x545   :  { %1906 = dma.done.wait [#allocation3], 896  }
 0x546   :  { %1907 = vsyncadd [#allocation3], 4294966400 }
 0x547   :  { %1856 = vsyncpa [#allocation3], 1 }

</bundles_post_ra>
